<compile_context>
chip_gen: v7x
topology: tpu7x:2x2x1
jax: 0.10.0
libtpu: 0.0.40
codegen_flags: <defaults>
</compile_context>

<pallas_src>
import functools

import jax
import jax.numpy as jnp
from jax import lax
from jax.experimental import pallas as pl
from jax.experimental.pallas import tpu as pltpu


# Contract dim 1 of both operands: A @ B^T without materializing B^T.
_DN = (((1,), (1,)), ((), ()))


def _clip_loss_kernel(scale_ref,                   # (1, 1) f32 in SMEM
                      img_i_ref, txt_i_ref,        # row blocks    (TM, D)
                      txt_j_ref,                   # column block  (TN, D)
                      out_row_ref,                 # (TM, 1)  lse_img - 2*diag
                      out_cmax_ref, out_csum_ref,  # (NJ, TN) column partials
                      img_s_ref,                   # (TM, D) scaled-row scratch
                      m_ref, l_ref,                # (TM, 1) online-LSE state
                      *, n_valid, block_m, block_n, masked):
    i = pl.program_id(0)
    j = pl.program_id(1)
    nj = pl.num_programs(1)
    scale = scale_ref[0, 0]

    @pl.when(j == 0)
    def _():
        # j-invariant: fold logit_scale into the image rows once per row block
        # (O(N*D) total VPU work), not once per grid step.
        img_s_ref[...] = (img_i_ref[...].astype(jnp.float32)
                          * scale).astype(img_s_ref.dtype)
        m_ref[...] = jnp.full(m_ref.shape, -jnp.inf, dtype=jnp.float32)
        l_ref[...] = jnp.zeros(l_ref.shape, dtype=jnp.float32)

    # Single MXU matmul per tile: (TM, TN) block of scale * img @ txt^T.
    s = lax.dot_general(img_s_ref[...], txt_j_ref[...], dimension_numbers=_DN,
                        preferred_element_type=jnp.float32)

    if masked:   # trace-time branch: only emitted when the batch was padded
        neg = jnp.float32(-1e30)
        col_ids = j * block_n + lax.broadcasted_iota(jnp.int32, (1, block_n), 1)
        row_ids = i * block_m + lax.broadcasted_iota(jnp.int32, (block_m, 1), 0)
        s_r = jnp.where(col_ids < n_valid, s, neg)   # mask padded columns
        s_c = jnp.where(row_ids < n_valid, s, neg)   # mask padded rows
    else:
        s_r = s
        s_c = s

    # Image direction: flash-style online logsumexp over the j (column) axis.
    m_new = jnp.maximum(m_ref[...], jnp.max(s_r, axis=1, keepdims=True))
    l_ref[...] = (l_ref[...] * jnp.exp(m_ref[...] - m_new)
                  + jnp.sum(jnp.exp(s_r - m_new), axis=1, keepdims=True))
    m_ref[...] = m_new

    # Text direction: per-tile (max, sum-exp) column partials; the cheap merge
    # over row blocks happens outside the kernel, so the i axis stays parallel.
    cmax = jnp.max(s_c, axis=0, keepdims=True)                    # (1, TN)
    csum = jnp.sum(jnp.exp(s_c - cmax), axis=0, keepdims=True)    # (1, TN)
    out_cmax_ref[pl.ds(j, 1), :] = cmax
    out_csum_ref[pl.ds(j, 1), :] = csum

    @pl.when(j == nj - 1)
    def _():
        # Correct-pair logits straight from the feature tiles (no NxN masks).
        diag = scale * jnp.sum(img_i_ref[...].astype(jnp.float32)
                               * txt_i_ref[...].astype(jnp.float32),
                               axis=1, keepdims=True)             # (TM, 1)
        out_row_ref[...] = m_ref[...] + jnp.log(l_ref[...]) - 2.0 * diag


def _round_up(x, m):
    return (x + m - 1) // m * m


def _pick_tile(n_pad, candidates):
    for c in candidates:
        if n_pad % c == 0:
            return c
    return 128   # unreachable: n_pad is a multiple of 128 and 128 is listed


def _row_tile_candidates():
    # v6e needs TM >= ~700 (bf16) to clear the HBM->MXU ridge; v7x (64 MiB
    # VMEM, ridge ~310) and v5e are well served by 512.
    try:
        kind = jax.devices()[0].device_kind.lower()
    except Exception:
        kind = ""
    if "v6" in kind:
        return (1024, 512, 256, 128)
    return (512, 256, 128)


def clip_loss(image_features, text_features, logit_scale, *,
              block_m=None, block_n=None, compute_dtype=None):
    """Pallas implementation of ClipLoss.forward (world_size == 1).

    compute_dtype: dtype of the feature tiles fed to the MXU.  Pass
    jnp.bfloat16 for the production configuration (halves HBM traffic and
    unlocks full MXU rate); accumulation is always f32.
    """
    n, d = image_features.shape
    assert text_features.shape == (n, d)

    cdtype = (jnp.dtype(compute_dtype) if compute_dtype is not None
              else jnp.dtype(image_features.dtype))
    img = image_features.astype(cdtype)
    txt = text_features.astype(cdtype)

    # Pad the batch to a multiple of 128 so tiles always divide it; padded
    # rows/cols are masked out of the LSE inside the kernel.
    n_pad = _round_up(n, 128)
    if n_pad != n:
        img = jnp.pad(img, ((0, n_pad - n), (0, 0)))
        txt = jnp.pad(txt, ((0, n_pad - n), (0, 0)))

    tm = block_m if block_m is not None else _pick_tile(n_pad, _row_tile_candidates())
    tn = block_n if block_n is not None else _pick_tile(n_pad, (256, 128))
    assert n_pad % tm == 0 and n_pad % tn == 0, "tiles must divide padded batch"
    assert tm % 8 == 0 and tn % 128 == 0
    ni, nj = n_pad // tm, n_pad // tn

    scale = jnp.asarray(logit_scale, dtype=jnp.float32).reshape(1, 1)

    kernel = functools.partial(_clip_loss_kernel, n_valid=n, block_m=tm,
                               block_n=tn, masked=(n_pad != n))

    itemsize = jnp.dtype(cdtype).itemsize
    cost = pl.CostEstimate(
        flops=2 * n_pad * n_pad * d,            # one (N, N, D) matmul
        transcendentals=2 * n_pad * n_pad,      # one exp per logit per direction
        bytes_accessed=(2 * n_pad * d + ni * n_pad * d) * itemsize
        + (n_pad + 2 * ni * n_pad) * 4,
    )
    vmem_est = ((2 * tm + tn) * d * itemsize * 2   # double-buffered input tiles
                + tm * d * itemsize                # scaled-row scratch
                + 4 * tm * 128 * 4                 # (TM, 1) f32 state / output
                + 2 * 2 * nj * tn * 4              # column-partial out blocks
                + 8 * tm * tn * 4)                 # f32 tile intermediates
    vmem_limit = int(min(max(2 * vmem_est, 32 * 1024 * 1024), 64 * 1024 * 1024))

    out_row, cmax, csum = pl.pallas_call(
        kernel,
        out_shape=(
            jax.ShapeDtypeStruct((n_pad, 1), jnp.float32),
            jax.ShapeDtypeStruct((ni, nj, tn), jnp.float32),
            jax.ShapeDtypeStruct((ni, nj, tn), jnp.float32),
        ),
        grid_spec=pltpu.PrefetchScalarGridSpec(
            num_scalar_prefetch=0,
            grid=(ni, nj),
            in_specs=[
                pl.BlockSpec(memory_space=pltpu.MemorySpace.SMEM),   # scale
                pl.BlockSpec((tm, d), lambda i, j: (i, 0)),          # img rows
                pl.BlockSpec((tm, d), lambda i, j: (i, 0)),          # txt rows
                pl.BlockSpec((tn, d), lambda i, j: (j, 0)),          # txt cols
            ],
            out_specs=[
                pl.BlockSpec((tm, 1), lambda i, j: (i, 0)),
                pl.BlockSpec((None, nj, tn), lambda i, j: (i, 0, 0)),
                pl.BlockSpec((None, nj, tn), lambda i, j: (i, 0, 0)),
            ],
            scratch_shapes=[
                pltpu.VMEM((tm, d), cdtype),         # scaled image rows
                pltpu.VMEM((tm, 1), jnp.float32),    # running row max
                pltpu.VMEM((tm, 1), jnp.float32),    # running row sum-exp
            ],
        ),
        compiler_params=pltpu.CompilerParams(
            dimension_semantics=("parallel", "arbitrary"),
            vmem_limit_bytes=vmem_limit),
        cost_estimate=cost,
    )(scale, img, txt, txt)

    # Merge the text-direction column partials over row blocks (tiny).
    m_col = jnp.max(cmax, axis=0)                                 # (nj, TN)
    s_col = jnp.sum(csum * jnp.exp(cmax - m_col[None]), axis=0)   # (nj, TN)
    lse_col = (m_col + jnp.log(s_col)).reshape(n_pad)[:n]

    row_part = out_row[:n, 0]                  # lse_img - 2 * diag, per row
    return 0.5 * (jnp.sum(row_part) + jnp.sum(lse_col)) / jnp.float32(n)


def _clip_loss_ref(image_features, text_features, logit_scale):
    """Pure-JAX reference matching the PyTorch forward (full f32 matmuls)."""
    img = image_features.astype(jnp.float32)
    txt = text_features.astype(jnp.float32)
    hp = jax.lax.Precision.HIGHEST
    logits_per_image = logit_scale * jnp.dot(img, txt.T, precision=hp)
    logits_per_text = logit_scale * jnp.dot(txt, img.T, precision=hp)
    labels = jnp.arange(img.shape[0])

    def ce(logits):
        lse = jax.nn.logsumexp(logits, axis=1)
        correct = logits[jnp.arange(logits.shape[0]), labels]
        return jnp.mean(lse - correct)

    return 0.5 * (ce(logits_per_image) + ce(logits_per_text))


if __name__ == "__main__":
    key = jax.random.PRNGKey(0)
    k_img, k_txt = jax.random.split(key)

    N, D = 256, 128
    img = jax.random.normal(k_img, (N, D), dtype=jnp.float32)
    txt = jax.random.normal(k_txt, (N, D), dtype=jnp.float32)
    # L2-normalize as CLIP does before the loss.
    img = img / jnp.linalg.norm(img, axis=-1, keepdims=True)
    txt = txt / jnp.linalg.norm(txt, axis=-1, keepdims=True)
    logit_scale = jnp.float32(1.0 / 0.07)   # exp(ln(1/0.07))

    ref = _clip_loss_ref(img, txt, logit_scale)

    # 1) f32 path with an explicit (2, 2) grid: exercises the online row-LSE
    #    and the column-partial merge.
    loss32 = jax.block_until_ready(
        clip_loss(img, txt, logit_scale, block_m=128, block_n=128))
    assert jnp.allclose(loss32, ref, rtol=1e-2, atol=5e-2), (loss32, ref)

    # 2) Non-divisible batch (N=200 -> padded to 256): exercises padding/masking.
    n2 = 200
    ref2 = _clip_loss_ref(img[:n2], txt[:n2], logit_scale)
    loss2 = jax.block_until_ready(clip_loss(img[:n2], txt[:n2], logit_scale))
    assert jnp.allclose(loss2, ref2, rtol=1e-2, atol=5e-2), (loss2, ref2)

    # 3) bf16 compute path (production config), checked against a reference
    #    that sees the same bf16-rounded features.
    loss_bf16 = jax.block_until_ready(
        clip_loss(img, txt, logit_scale, compute_dtype=jnp.bfloat16))
    ref_bf16 = _clip_loss_ref(img.astype(jnp.bfloat16).astype(jnp.float32),
                              txt.astype(jnp.bfloat16).astype(jnp.float32),
                              logit_scale)
    assert jnp.allclose(loss_bf16, ref_bf16, rtol=2e-2, atol=5e-2), (
        loss_bf16, ref_bf16)

    print("KERNEL_OK")
</pallas_src>

<mosaic_0001>
module attributes {stable_mosaic.version = 11 : i64} {
  func.func @_clip_loss_kernel(%arg0: i32, %arg1: i32, %arg2: memref<1x1xf32, #tpu.memory_space<smem>>, %arg3: memref<128x128xf32, #tpu.memory_space<vmem>>, %arg4: memref<128x128xf32, #tpu.memory_space<vmem>>, %arg5: memref<128x128xf32, #tpu.memory_space<vmem>>, %arg6: memref<128x1xf32, #tpu.memory_space<vmem>>, %arg7: memref<1x2x128xf32, #tpu.memory_space<vmem>>, %arg8: memref<1x2x128xf32, #tpu.memory_space<vmem>>, %arg9: memref<128x128xf32, #tpu.memory_space<vmem>>, %arg10: memref<128x1xf32, #tpu.memory_space<vmem>>, %arg11: memref<128x1xf32, #tpu.memory_space<vmem>>) attributes {dimension_semantics = [#tpu.dimension_semantics<parallel>, #tpu.dimension_semantics<arbitrary>], iteration_bounds = array<i64: 2, 2>, scalar_prefetch = 0 : i64, scratch_operands = 3 : i64, tpu.core_type = #tpu.core_type<tc>, window_params = [{transform_indices = @transform_0, window_bounds = array<i64: 1, 1>}, {transform_indices = @transform_1, window_bounds = array<i64: 128, 128>}, {transform_indices = @transform_2, window_bounds = array<i64: 128, 128>}, {transform_indices = @transform_3, window_bounds = array<i64: 128, 128>}, {transform_indices = @transform_4, window_bounds = array<i64: 128, 1>}, {transform_indices = @transform_5, window_bounds = array<i64: 1, 2, 128>}, {transform_indices = @transform_6, window_bounds = array<i64: 1, 2, 128>}]} {
    %c0 = arith.constant 0 : index
    %c0_0 = arith.constant 0 : index
    %0 = memref.load %arg2[%c0, %c0_0] : memref<1x1xf32, #tpu.memory_space<smem>>
    %c0_i32 = arith.constant 0 : i32
    %1 = arith.cmpi eq, %arg1, %c0_i32 : i32
    %2 = arith.extui %1 : i1 to i32
    %c0_i32_1 = arith.constant 0 : i32
    %3 = arith.cmpi ne, %2, %c0_i32_1 : i32
    scf.if %3 {
      %c0_25 = arith.constant 0 : index
      %c0_26 = arith.constant 0 : index
      %42 = vector.load %arg3[%c0_25, %c0_26] : memref<128x128xf32, #tpu.memory_space<vmem>>, vector<128x128xf32>
      %43 = vector.broadcast %0 : f32 to vector<128x128xf32>
      %44 = arith.mulf %42, %43 : vector<128x128xf32>
      %c0_27 = arith.constant 0 : index
      %c0_28 = arith.constant 0 : index
      %45 = vector.load %arg9[%c0_27, %c0_28] : memref<128x128xf32, #tpu.memory_space<vmem>>, vector<128x128xf32>
      tpu.vector_store %arg9[%c0_27, %c0_28], %44 {strides = array<i32>} : memref<128x128xf32, #tpu.memory_space<vmem>>, vector<128x128xf32>,
      %cst_29 = arith.constant 0xFF800000 : f32
      %46 = vector.broadcast %cst_29 : f32 to vector<128x1xf32>
      %c0_30 = arith.constant 0 : index
      %c0_31 = arith.constant 0 : index
      %47 = vector.load %arg10[%c0_30, %c0_31] : memref<128x1xf32, #tpu.memory_space<vmem>>, vector<128x1xf32>
      tpu.vector_store %arg10[%c0_30, %c0_31], %46 {strides = array<i32>} : memref<128x1xf32, #tpu.memory_space<vmem>>, vector<128x1xf32>,
      %cst_32 = arith.constant 0.000000e+00 : f32
      %48 = vector.broadcast %cst_32 : f32 to vector<128x1xf32>
      %c0_33 = arith.constant 0 : index
      %c0_34 = arith.constant 0 : index
      %49 = vector.load %arg11[%c0_33, %c0_34] : memref<128x1xf32, #tpu.memory_space<vmem>>, vector<128x1xf32>
      tpu.vector_store %arg11[%c0_33, %c0_34], %48 {strides = array<i32>} : memref<128x1xf32, #tpu.memory_space<vmem>>, vector<128x1xf32>,
    } else {
    }
    %c0_2 = arith.constant 0 : index
    %c0_3 = arith.constant 0 : index
    %4 = vector.load %arg9[%c0_2, %c0_3] : memref<128x128xf32, #tpu.memory_space<vmem>>, vector<128x128xf32>
    %c0_4 = arith.constant 0 : index
    %c0_5 = arith.constant 0 : index
    %5 = vector.load %arg5[%c0_4, %c0_5] : memref<128x128xf32, #tpu.memory_space<vmem>>, vector<128x128xf32>
    %cst = arith.constant dense<0.000000e+00> : vector<128x128xf32>
    %6 = tpu.matmul %4, %5, %cst {dimension_numbers = #tpu.dot_dimension_numbers<[1], [1], [0], [0], [0, 0, 1, 0], [], []>} : vector<128x128xf32>, vector<128x128xf32>, vector<128x128xf32> -> vector<128x128xf32>
    %c0_6 = arith.constant 0 : index
    %c0_7 = arith.constant 0 : index
    %7 = vector.load %arg10[%c0_6, %c0_7] : memref<128x1xf32, #tpu.memory_space<vmem>>, vector<128x1xf32>
    %cst_8 = arith.constant dense<0xFF800000> : vector<128xf32>
    %8 = vector.multi_reduction <maximumf>, %6, %cst_8 [1] : vector<128x128xf32> to vector<128xf32>
    %9 = vector.shape_cast %8 : vector<128xf32> to vector<128x1xf32>
    %10 = arith.maximumf %7, %9 : vector<128x1xf32>
    %c0_9 = arith.constant 0 : index
    %c0_10 = arith.constant 0 : index
    %11 = vector.load %arg11[%c0_9, %c0_10] : memref<128x1xf32, #tpu.memory_space<vmem>>, vector<128x1xf32>
    %c0_11 = arith.constant 0 : index
    %c0_12 = arith.constant 0 : index
    %12 = vector.load %arg10[%c0_11, %c0_12] : memref<128x1xf32, #tpu.memory_space<vmem>>, vector<128x1xf32>
    %13 = arith.subf %12, %10 : vector<128x1xf32>
    %14 = math.exp %13 : vector<128x1xf32>
    %15 = arith.mulf %11, %14 : vector<128x1xf32>
    %16 = vector.broadcast %10 : vector<128x1xf32> to vector<128x128xf32>
    %17 = arith.subf %6, %16 : vector<128x128xf32>
    %18 = math.exp %17 : vector<128x128xf32>
    %cst_13 = arith.constant dense<0.000000e+00> : vector<128xf32>
    %19 = vector.multi_reduction <add>, %18, %cst_13 [1] : vector<128x128xf32> to vector<128xf32>
    %20 = vector.shape_cast %19 : vector<128xf32> to vector<128x1xf32>
    %21 = arith.addf %15, %20 : vector<128x1xf32>
    %c0_14 = arith.constant 0 : index
    %c0_15 = arith.constant 0 : index
    %22 = vector.load %arg11[%c0_14, %c0_15] : memref<128x1xf32, #tpu.memory_space<vmem>>, vector<128x1xf32>
    tpu.vector_store %arg11[%c0_14, %c0_15], %21 {strides = array<i32>} : memref<128x1xf32, #tpu.memory_space<vmem>>, vector<128x1xf32>,
    %c0_16 = arith.constant 0 : index
    %c0_17 = arith.constant 0 : index
    %23 = vector.load %arg10[%c0_16, %c0_17] : memref<128x1xf32, #tpu.memory_space<vmem>>, vector<128x1xf32>
    tpu.vector_store %arg10[%c0_16, %c0_17], %10 {strides = array<i32>} : memref<128x1xf32, #tpu.memory_space<vmem>>, vector<128x1xf32>,
    %cst_18 = arith.constant dense<0xFF800000> : vector<128xf32>
    %24 = vector.multi_reduction <maximumf>, %6, %cst_18 [0] : vector<128x128xf32> to vector<128xf32>
    %25 = vector.shape_cast %24 : vector<128xf32> to vector<1x128xf32>
    %26 = vector.broadcast %25 : vector<1x128xf32> to vector<128x128xf32>
    %27 = arith.subf %6, %26 : vector<128x128xf32>
    %28 = math.exp %27 : vector<128x128xf32>
    %cst_19 = arith.constant dense<0.000000e+00> : vector<128xf32>
    %29 = vector.multi_reduction <add>, %28, %cst_19 [0] : vector<128x128xf32> to vector<128xf32>
    %30 = vector.shape_cast %29 : vector<128xf32> to vector<1x128xf32>
    %c0_20 = arith.constant 0 : index
    %31 = arith.index_cast %arg1 : i32 to index
    %c0_21 = arith.constant 0 : index
    %32 = vector.load %arg7[%c0_20, %31, %c0_21] : memref<1x2x128xf32, #tpu.memory_space<vmem>>, vector<1x1x128xf32>
    %33 = vector.shape_cast %32 : vector<1x1x128xf32> to vector<1x128xf32>
    %34 = vector.shape_cast %25 : vector<1x128xf32> to vector<1x1x128xf32>
    tpu.vector_store %arg7[%c0_20, %31, %c0_21], %34 {strides = array<i32>} : memref<1x2x128xf32, #tpu.memory_space<vmem>>, vector<1x1x128xf32>,
    %c0_22 = arith.constant 0 : index
    %35 = arith.index_cast %arg1 : i32 to index
    %c0_23 = arith.constant 0 : index
    %36 = vector.load %arg8[%c0_22, %35, %c0_23] : memref<1x2x128xf32, #tpu.memory_space<vmem>>, vector<1x1x128xf32>
    %37 = vector.shape_cast %36 : vector<1x1x128xf32> to vector<1x128xf32>
    %38 = vector.shape_cast %30 : vector<1x128xf32> to vector<1x1x128xf32>
    tpu.vector_store %arg8[%c0_22, %35, %c0_23], %38 {strides = array<i32>} : memref<1x2x128xf32, #tpu.memory_space<vmem>>, vector<1x1x128xf32>,
    %c1_i32 = arith.constant 1 : i32
    %39 = arith.cmpi eq, %arg1, %c1_i32 : i32
    %40 = arith.extui %39 : i1 to i32
    %c0_i32_24 = arith.constant 0 : i32
    %41 = arith.cmpi ne, %40, %c0_i32_24 : i32
    scf.if %41 {
      %c0_25 = arith.constant 0 : index
      %c0_26 = arith.constant 0 : index
      %42 = vector.load %arg3[%c0_25, %c0_26] : memref<128x128xf32, #tpu.memory_space<vmem>>, vector<128x128xf32>
      %c0_27 = arith.constant 0 : index
      %c0_28 = arith.constant 0 : index
      %43 = vector.load %arg4[%c0_27, %c0_28] : memref<128x128xf32, #tpu.memory_space<vmem>>, vector<128x128xf32>
      %44 = arith.mulf %42, %43 : vector<128x128xf32>
      %cst_29 = arith.constant dense<0.000000e+00> : vector<128xf32>
      %45 = vector.multi_reduction <add>, %44, %cst_29 [1] : vector<128x128xf32> to vector<128xf32>
      %46 = vector.shape_cast %45 : vector<128xf32> to vector<128x1xf32>
      %47 = vector.broadcast %0 : f32 to vector<128x1xf32>
      %48 = arith.mulf %47, %46 : vector<128x1xf32>
      %c0_30 = arith.constant 0 : index
      %c0_31 = arith.constant 0 : index
      %49 = vector.load %arg10[%c0_30, %c0_31] : memref<128x1xf32, #tpu.memory_space<vmem>>, vector<128x1xf32>
      %c0_32 = arith.constant 0 : index
      %c0_33 = arith.constant 0 : index
      %50 = vector.load %arg11[%c0_32, %c0_33] : memref<128x1xf32, #tpu.memory_space<vmem>>, vector<128x1xf32>
      %51 = math.log %50 : vector<128x1xf32>
      %52 = arith.addf %49, %51 : vector<128x1xf32>
      %cst_34 = arith.constant 2.000000e+00 : f32
      %53 = vector.broadcast %cst_34 : f32 to vector<128x1xf32>
      %54 = arith.mulf %53, %48 : vector<128x1xf32>
      %55 = arith.subf %52, %54 : vector<128x1xf32>
      %c0_35 = arith.constant 0 : index
      %c0_36 = arith.constant 0 : index
      %56 = vector.load %arg6[%c0_35, %c0_36] : memref<128x1xf32, #tpu.memory_space<vmem>>, vector<128x1xf32>
      tpu.vector_store %arg6[%c0_35, %c0_36], %55 {strides = array<i32>} : memref<128x1xf32, #tpu.memory_space<vmem>>, vector<128x1xf32>,
    } else {
    }
    return
  }
  func.func @transform_0(%arg0: i32, %arg1: i32) -> (i32, i32) {
    %c0_i32 = arith.constant 0 : i32
    %c0_i32_0 = arith.constant 0 : i32
    %c0_i32_1 = arith.constant 0 : i32
    return %c0_i32, %c0_i32_0 : i32, i32
  }
  func.func @transform_1(%arg0: i32, %arg1: i32) -> (i32, i32) {
    %c0_i32 = arith.constant 0 : i32
    %c0_i32_0 = arith.constant 0 : i32
    return %arg0, %c0_i32 : i32, i32
  }
  func.func @transform_2(%arg0: i32, %arg1: i32) -> (i32, i32) {
    %c0_i32 = arith.constant 0 : i32
    %c0_i32_0 = arith.constant 0 : i32
    return %arg0, %c0_i32 : i32, i32
  }
  func.func @transform_3(%arg0: i32, %arg1: i32) -> (i32, i32) {
    %c0_i32 = arith.constant 0 : i32
    %c0_i32_0 = arith.constant 0 : i32
    return %arg1, %c0_i32 : i32, i32
  }
  func.func @transform_4(%arg0: i32, %arg1: i32) -> (i32, i32) {
    %c0_i32 = arith.constant 0 : i32
    %c0_i32_0 = arith.constant 0 : i32
    return %arg0, %c0_i32 : i32, i32
  }
  func.func @transform_5(%arg0: i32, %arg1: i32) -> (i32, i32, i32) {
    %c0_i32 = arith.constant 0 : i32
    %c0_i32_0 = arith.constant 0 : i32
    %c0_i32_1 = arith.constant 0 : i32
    return %arg0, %c0_i32, %c0_i32_0 : i32, i32, i32
  }
  func.func @transform_6(%arg0: i32, %arg1: i32) -> (i32, i32, i32) {
    %c0_i32 = arith.constant 0 : i32
    %c0_i32_0 = arith.constant 0 : i32
    %c0_i32_1 = arith.constant 0 : i32
    return %arg0, %c0_i32, %c0_i32_0 : i32, i32, i32
  }
}

</mosaic_0001>

<bundles_post_ra>
// kernel: tpu_custom_call.1
= control target key start
LH: loop header
LB: loop body
LE: loop exit
PB: predicated region body
PF: predicated region fallthrough
CT: control target
= control target key end

     0   :  { %s3185_s0 = inlined_call_operand.<no memory space> [shape: f32[1,1], index: 0, kind: input, shape index: {}]   ;;  %s3186_s1 = inlined_call_operand.hbm [shape: f32[256,128], index: 1, kind: input, shape index: {}]   ;;  %s3187_s2 = inlined_call_operand.hbm [shape: f32[256,128], index: 2, kind: input, shape index: {}]   ;;  %s3188_s3 = inlined_call_operand.hbm [shape: f32[256,128], index: 3, kind: input, shape index: {}]   ;;  %s3189_s4 = inlined_call_operand.vmem [shape: f32[256,1], index: 4, kind: output, shape index: {0}]   ;;  %s3190_s5 = inlined_call_operand.hbm [shape: f32[2,2,128], index: 5, kind: output, shape index: {1}]   ;;  %s3191_s6 = inlined_call_operand.hbm [shape: f32[2,2,128], index: 6, kind: output, shape index: {2}]  }
   0x1   :  { %3212 = sst [smem:[#allocation25_spill]] %s3186_s1 }
   0x2   :  { %3213 = sst [smem:[#allocation26_spill]] %s3187_s2 }
   0x3   :  { %3214 = sst [smem:[#allocation27_spill]] %s3189_s4 }
   0x4   :  { %3215 = sst [smem:[#allocation28_spill]] %s3190_s5 }
   0x5   :  { %3216 = sst [smem:[#allocation29_spill]] %s3191_s6 }
   0x6   :  { %12 = sst [smem:[#allocation5]] %s3185_s0 }
   0x7   :  { %13 = vsyncpa [#allocation7], 0 }
   0x8   :  { %15 = vsyncpa [#allocation7 + $0x1], 0 }
   0x9   :  { %16 = vsyncpa [#allocation10], 0 }
   0xa   :  { %18 = vsyncpa [#allocation10 + $0x1], 0 }
   0xb   :  { %19 = vsyncpa [#allocation8], 0 }
   0xc   :  { %21 = vsyncpa [#allocation8 + $0x1], 0 }
   0xd   :  { %22 = vsyncpa [#allocation14], 0 }
   0xe   :  { %24 = vsyncpa [#allocation14 + $0x1], 0  ;;  %s2273_s23 = smov 0   ;;  %s2275_s24 = smov 0  }
   0xf   :  { %s2277_s25 = smov 0   ;;  %s2279_s26 = smov 0  }
  0x10   :  { %s2281_s27 = smov 0   ;;  %s2283_s28 = smov 0  }
  0x11   :  { %s2285_s0 = smov 0   ;;  %s2287_s29 = smov 0  }
  0x12   :  { %s2289_s30 = smov 0   ;;  %s2291_s7 = smov 0  }
  0x13   :  { %s2293_s8 = smov 0  }
  0x14 LB: > { %3217 = sst [smem:[#allocation20_spill]] %s2195_s26  ;;  %s2329_s9 = sadd.s32 4294967295, %s2223_s8   ;;  %s2223_s8 = sphi %s2293_s8, %s30_s8   ;;  %s2219_s7 = sphi %s2291_s7, %s3279_s7   ;;  %s2215_s30 = sphi %s2289_s30, %s3278_s30   ;;  %s2211_s29 = sphi %s2287_s29, %s3277_s29   ;;  %s2207_s0 = sphi %s2285_s0, %s3276_s0   ;;  %s2203_s28 = sphi %s2283_s28, %s3275_s28   ;;  %s2199_s27 = sphi %s2281_s27, %s3274_s27   ;;  %s2195_s26 = sphi %s2279_s26, %s3273_s26   ;;  %s2191_s25 = sphi %s2277_s25, %s3272_s25   ;;  %s2187_s24 = sphi %s2275_s24, %s3271_s24   ;;  %s2183_s23 = sphi %s2273_s23, %s3270_s23  }
  0x15   : > { %3218 = sst [smem:[#allocation21_spill]] %s2207_s0  ;;  %s1552_s10 = sadd.s32 4294967294, %s2223_s8  }
  0x16   : > { %p77_p0 = scmp.ne.s32.totalorder %s2203_s28, %s2199_s27  ;;  %p3199_p1 = scmp.eq.s32.totalorder %s2223_s8, 0 }
  0x17   : > { %p83_p2 = scmp.ne.s32.totalorder %s2199_s27, %s2195_s26  ;;  %p3198_p3 = scmp.eq.s32.totalorder %s2329_s9, 0 }
  0x18   : > { %p79_p4 = por %p3199_p1, %p77_p0  ;;  %p185_p5 = scmp.eq.s32.totalorder %s2329_s9, 3 }
  0x19   : > { %p2345_p6 = por %p3198_p3, %p83_p2  ;;  %p191_p7 = scmp.eq.s32.totalorder %s1552_s10, 3 }
  0x1a   : > { %p2349_p8 = por %p185_p5, %p77_p0  ;;  %p3197_p10 = scmp.lt.s32.totalorder %s2223_s8, 4 }
  0x1b   : > { %s3219_s13 = scalar_select %p2345_p6, 1, 0 }
  0x1c   : > { %s3220_s14 = scalar_select %p2349_p8, 1, 0 }
  0x1d   : > { %p2353_p9 = por %p191_p7, %p83_p2  ;;  %s3192_s16 = sand.u32 1, %s2203_s28  }
  0x1e   : > { %3221 = sst [smem:[#allocation22_spill]] %s3220_s14  ;;  %s3194_s17 = sshll.u32 %s2219_s7, 11 }
  0x1f   : > { %s3222_s15 = scalar_select %p2353_p9, 1, 0 }
  0x20   : > { %s2362_s18 = sshll.u32 %s3192_s16, 7  ;;  %p2366_p11 = pnand %p3197_p10, %p79_p4 }
  0x21   : > { %3223 = sst [smem:[#allocation23_spill]] %s3222_s15  ;;  %s261_s20 = sand.u32 1, %s2223_s8  }
  0x22   : > { %s3225_s2 = sld [smem:[#allocation26_spill]]  ;;  %s265_s12 = scalar_lea.vmem [#allocation9], %s2362_s18 }
  0x23   : > { %s272_s11 = sshll.u32 %s265_s12, 4  ;;  %s2382_s16 = scalar_lea.sflag [#allocation10], %s261_s20  ;;  %s2379_s11 = int_to_ptr.vmem [resolvable:$true] %s272_s11 }
  0x24   : > { %p1973_p0 = pneg %p2366_p11 }
  0x28   : > { %s2376_s10 = scalar_lea.hbm %s3225_s2, %s3194_s17  ;;  %s1976_s17 = scalar_lea.hbm %s3225_s2, 4096 }
  0x29   : > { %s1971_s15 = scalar_lea.hbm %s2376_s10, 2048  ;;  %p1977_p5 = scmp.lt.u32.totalorder %s2376_s10, %s3225_s2 }
  0x2a   : > { %p1972_p13 = scmp.ne.s32.totalorder %s2376_s10, %s1971_s15  ;;  %p1978_p7 = scmp.lt.u32.totalorder %s1976_s17, %s1971_s15 }
  0x2b   : > { %p1980_p3 = scmp.lt.u32.totalorder %s1971_s15, %s2376_s10 }
  0x2c   : > { %p1974_p2 = pnand %p1973_p0, %p1972_p13  ;;  %p1979_p10 = por %p1978_p7, %p1977_p5 }
  0x2e   : > { %p1975_p4 = pneg %p1974_p2  ;;  %p1981_p1 = por %p1980_p3, %p1979_p10 }
  0x30   : > { %p1982_p12 = pnand %p1981_p1, %p1975_p4 }
  0x32   : > { %1985 = shalt.err (!%p1982_p12)
}
  0x33   : > { %s1986_s12 = scalar_lea.vmem %s2379_s11, 2048  ;;  %s2225_s20 = smov [#allocation9]  }
  0x34   : > { %p1987_p13 = scmp.ne.s32.totalorder %s2379_s11, %s1986_s12  ;;  %s1991_s21 = sshll.u32 %s2225_s20, 4  ;;  %s1992_s21 = int_to_ptr.vmem [resolvable:$false] %s1991_s21 }
  0x35   : > { %s1993_s6 = scalar_lea.vmem %s1992_s21, 4096  ;;  %p1994_p8 = scmp.lt.s32.totalorder %s2379_s11, %s1992_s21 }
  0x36   : > { %p1989_p2 = pnand %p1987_p13, %p1973_p0  ;;  %p1995_p5 = scmp.lt.s32.totalorder %s1993_s6, %s1986_s12 }
  0x38   : > { %p1990_p9 = pneg %p1989_p2  ;;  %p1996_p7 = por %p1995_p5, %p1994_p8 }
  0x3a   : > { %p1997_p3 = pnand %p1996_p7, %p1990_p9 }
  0x3c   : > { %2000 = shalt.err (!%p1997_p3)
}
  0x3d   : > { %s3201_s26 = smov 128   ;;  %s3203_s15 = smov 8  }
  0x3e   : > { %1735 = dma.hbm_to_vmem [thread:$0]  (!%p2366_p11), %s2376_s10, 2048, %s2379_s11, %s2382_s16, %s3201_s26, %s3201_s26, %s3203_s15  }
  0x3f   : > { %p301_p1 = scmp.lt.s32.totalorder %s2223_s8, 5  ;;  %p3226_p8 = scmp.ge.s32.totalorder %s2223_s8, 1 }
  0x40   : > { %s3228_s22 = sshll.u32 %s2219_s7, 11  ;;  %s3229_s1 = sld [smem:[#allocation25_spill]] }
  0x41   : > { %p2416_p9 = pnand %p3226_p8, %p301_p1  ;;  %s244_s6 = scalar_lea.vmem [#allocation6], %s2362_s18 }
  0x42   : > { %s251_s2 = sshll.u32 %s244_s6, 4  ;;  %s3230_s11 = sand.u32 1, %s2203_s28   ;;  %s2428_s2 = int_to_ptr.vmem [resolvable:$true] %s251_s2 }
  0x43   : > { %s2432_s10 = scalar_lea.sflag [#allocation7], %s3230_s11 }
  0x46   : > { %s2425_s21 = scalar_lea.hbm %s3229_s1, %s3228_s22  ;;  %s2006_s20 = scalar_lea.hbm %s3229_s1, 4096 }
  0x47   : > { %s2001_s26 = scalar_lea.hbm %s2425_s21, 2048  ;;  %p2007_p13 = scmp.lt.u32.totalorder %s2425_s21, %s3229_s1 }
  0x48   : > { %p2002_p10 = scmp.ne.s32.totalorder %s2425_s21, %s2001_s26  ;;  %p2008_p2 = scmp.lt.u32.totalorder %s2006_s20, %s2001_s26 }
  0x49   : > { %p2010_p7 = scmp.lt.u32.totalorder %s2001_s26, %s2425_s21 }
  0x4a   : > { %p2004_p12 = pnand %p2002_p10, %p1973_p0  ;;  %p2009_p5 = por %p2008_p2, %p2007_p13 }
  0x4c   : > { %p2005_p4 = pneg %p2004_p12  ;;  %p2011_p3 = por %p2010_p7, %p2009_p5 }
  0x4e   : > { %p2012_p1 = pnand %p2011_p3, %p2005_p4 }
  0x50   : > { %2015 = shalt.err (!%p2012_p1)
}
  0x51   : > { %s2016_s18 = scalar_lea.vmem %s2428_s2, 2048  ;;  %s2228_s6 = smov [#allocation6]  }
  0x52   : > { %p2017_p8 = scmp.ne.s32.totalorder %s2428_s2, %s2016_s18  ;;  %s2021_s11 = sshll.u32 %s2228_s6, 4  ;;  %s2022_s11 = int_to_ptr.vmem [resolvable:$false] %s2021_s11 }
  0x53   : > { %s2023_s5 = scalar_lea.vmem %s2022_s11, 4096  ;;  %p2024_p6 = scmp.lt.s32.totalorder %s2428_s2, %s2022_s11 }
  0x54   : > { %p2019_p10 = pnand %p2017_p8, %p1973_p0  ;;  %p2025_p13 = scmp.lt.s32.totalorder %s2023_s5, %s2016_s18 }
  0x56   : > { %p2020_p12 = pneg %p2019_p10  ;;  %p2026_p2 = por %p2025_p13, %p2024_p6 }
  0x58   : > { %p2027_p5 = pnand %p2026_p2, %p2020_p12 }
  0x5a   : > { %2030 = shalt.err (!%p2027_p5)
}
  0x5b   : > { %s3231_s26 = smov 8   ;;  %s3232_s15 = smov 128  }
  0x5c   : > { %1732 = dma.hbm_to_vmem [thread:$0]  (!%p2366_p11), %s2425_s21, 2048, %s2428_s2, %s2432_s10, %s3232_s15, %s3232_s15, %s3231_s26  }
  0x5d   : > { %s39_s19 = sadd.s32 1, %s2215_s30  ;;  %s122_s12 = sadd.s32 1, %s2191_s25 }
  0x5e   : > { %p40_p6 = scmp.ge.s32.totalorder %s39_s19, 2  ;;  %p129_p0 = scmp.ne.s32.totalorder %s2191_s25, %s2187_s24 }
  0x5f   : > { %p135_p4 = scmp.ne.s32.totalorder %s2187_s24, %s2183_s23  ;;  %s3234_s22 = sadd.s32 1, %s2219_s7 }
  0x60   : > { %s3281_s19 = smov (%p40_p6, %s39_s19), 0  ;;  %s3283_s22 = smov (!%p40_p6, %s3234_s22), %s2219_s7 }
  0x61   : > { %3233 = sst [smem:[#allocation24_spill]] %s3281_s19  ;;  %s119_s20 = ssub.s32 %s2215_s30, %s3281_s19 }
  0x62   : > { %p3235_p7 = scmp.eq.s32.totalorder %s2223_s8, 0  ;;  %p44_p11 = scmp.ge.s32.totalorder %s3283_s22, 2 }
  0x63   : > { %p120_p1 = scmp.eq.s32.totalorder %s119_s20, 0  ;;  %p3237_p8 = scmp.eq.s32.totalorder %s2329_s9, 0 }
  0x64   : > { %p2476_p3 = por %p129_p0, %p3235_p7  ;;  %s284_s23 = sand.u32 1, %s2191_s25  }
  0x65   : > { %p2482_p10 = por %p135_p4, %p3237_p8  ;;  %s3285_s22 = smov (%p44_p11, %s3283_s22), 0 }
  0x66   : > { %s2490_s21 = scalar_select %p120_p1, %s2191_s25, %s122_s12  }
  0x67   : > { %s3238_s2 = scalar_select %p2482_p10, 1, 0 }
  0x68   : > { %s67_s10 = ssub.s32 %s2219_s7, %s3285_s22  ;;  %s1561_s6 = sshll.u32 %s284_s23, 7 }
  0x69   : > { %p68_p12 = scmp.eq.s32.totalorder %s67_s10, 0  ;;  %s1582_s11 = sshll.u32 %s2215_s30, 11 }
  0x6a   : > { %s286_s5 = scalar_lea.vmem [#allocation11], %s1561_s6  ;;  %s3239_s19 = sadd.s32 1, %s2203_s28 }
  0x6b   : > { %s293_s1 = sshll.u32 %s286_s5, 4  ;;  %s2503_s4 = scalar_lea.hbm %s3188_s3, %s1582_s11  ;;  %s2505_s1 = int_to_ptr.vmem [resolvable:$true] %s293_s1 }
  0x6c   : > { %s2498_s14 = scalar_select %p68_p12, %s2203_s28, %s3239_s19  }
  0x6d   : > { %p3240_p13 = scmp.lt.s32.totalorder %s2223_s8, 4  ;;  %s2031_s19 = scalar_lea.hbm %s2503_s4, 2048 }
  0x6e   : > { %p2032_p5 = scmp.ne.s32.totalorder %s2503_s4, %s2031_s19  ;;  %s2036_s10 = scalar_lea.hbm %s3188_s3, 4096 }
  0x6f   : > { %p2511_p2 = pnand %p3240_p13, %p2476_p3  ;;  %p2037_p7 = scmp.lt.u32.totalorder %s2503_s4, %s3188_s3 }
  0x70   : > { %p2038_p3 = scmp.lt.u32.totalorder %s2036_s10, %s2031_s19  ;;  %p2040_p1 = scmp.lt.u32.totalorder %s2031_s19, %s2503_s4 }
  0x71   : > { %p2033_p6 = pneg %p2511_p2 }
  0x72   : > { %p2039_p11 = por %p2038_p3, %p2037_p7 }
  0x73   : > { %p2034_p0 = pnand %p2033_p6, %p2032_p5 }
  0x74   : > { %p2041_p8 = por %p2040_p1, %p2039_p11 }
  0x75   : > { %p2035_p4 = pneg %p2034_p0 }
  0x77   : > { %p2042_p12 = pnand %p2041_p8, %p2035_p4 }
  0x79   : > { %2045 = shalt.err (!%p2042_p12)
}
  0x7a   : > { %s2046_s11 = scalar_lea.vmem %s2505_s1, 2048  ;;  %s2229_s5 = smov [#allocation11]  }
  0x7b   : > { %p2047_p13 = scmp.ne.s32.totalorder %s2505_s1, %s2046_s11  ;;  %s2051_s20 = sshll.u32 %s2229_s5, 4  ;;  %s2052_s20 = int_to_ptr.vmem [resolvable:$false] %s2051_s20 }
  0x7c   : > { %s2053_s0 = scalar_lea.vmem %s2052_s20, 4096  ;;  %p2054_p10 = scmp.lt.s32.totalorder %s2505_s1, %s2052_s20 }
  0x7d   : > { %p2049_p5 = pnand %p2047_p13, %p2033_p6  ;;  %p2055_p7 = scmp.lt.s32.totalorder %s2053_s0, %s2046_s11 }
  0x7f   : > { %p2050_p0 = pneg %p2049_p5  ;;  %p2056_p3 = por %p2055_p7, %p2054_p10 }
  0x81   : > { %p2057_p11 = pnand %p2056_p3, %p2050_p0 }
  0x83   : > { %2060 = shalt.err (!%p2057_p11)
}
  0x84   : > { %1738 = dma.hbm_to_vmem [thread:$0]  (!%p2511_p2), %s2503_s4, 2048, %s2505_s1, %s2382_s16, %s3232_s15, %s3232_s15, %s3231_s26  }
  0x85   : > { %305 = sbr.rel (%p2416_p9) target bundleno = 1138 (0x472), region = 36  ;;  %s2547_s19 = sand.u32 (!%p2416_p9), 1, %s2199_s27  }
  0x86   : > { %s1565_s23 = sshll.u32 (!%p2416_p9), %s2547_s19, 7  ;;  %s308_s10 = scalar_lea.sflag (!%p2416_p9), [#allocation7], %s2547_s19 }
  0x87   : > { %s2551_s18 = scalar_lea.vmem (!%p2416_p9), [#allocation6], %s1565_s23  ;;  %p3242_p10 = scmp.ne.s32.totalorder (!%p2416_p9), %s3219_s13, 0 }
  0x8c   : > { %2162 = dma.done.wait (%p3242_p10), %s308_s10, 2048  }
  0x8d   : > { %2164 = vsyncadd (%p3242_p10), %s308_s10, 4294965248  ;;  %s316_s1 = sand.u32 1, %s2329_s9   ;;  %s2558_s16 = scalar_lea.vmem [#allocation9], %s1565_s23 }
  0x8e   : > { %s317_s4 = scalar_lea.sflag [#allocation10], %s316_s1 }
  0x8f   : > { %2166 = dma.done.wait (%p3242_p10), %s317_s4, 2048  }
  0x90   : > { %2168 = vsyncadd (%p3242_p10), %s317_s4, 4294965248  ;;  %s327_s17 = sand.u32 1, %s2187_s24   ;;  %p3243_p9 = scmp.ne.s32.totalorder %s3238_s2, 0 }
  0x91   : > { %s1567_s26 = sshll.u32 %s327_s17, 7 }
  0x92   : > { %s2565_s15 = scalar_lea.vmem [#allocation11], %s1567_s26 }
  0x93   : > { %2170 = dma.done.wait (%p3243_p9), %s317_s4, 2048  }
  0x94   : > { %2172 = vsyncadd (%p3243_p9), %s317_s4, 4294965248  ;;  %s1568_s9 = sshll.u32 %s2547_s19, 1  ;;  %s1570_s12 = sshll.u32 %s2211_s29, 4 }
  0x95   : > { %s2573_s6 = sld [smem:[#allocation5]]  ;;  %p382_p2 = scmp.lt.s32.totalorder %s1570_s12, 31 }
  0x96   : > { %s3244_s20 = sld [smem:[#allocation27_spill]]  ;;  %s2580_s23 = scalar_lea.vmem [#allocation12], %s1568_s9 }
  0x97   : > { %s3287_s12 = smov (!%p382_p2, %s1570_s12), 31  ;;  %s2582_s10 = scalar_lea.vmem [#allocation13], %s1568_s9 }
  0x98   : > { %s1571_s13 = sshll.u32 %s3287_s12, 3  ;;  %s3245_s2 = sld [smem:[#allocation21_spill]] }
  0x9c   : > { %s2578_s0 = scalar_lea.vmem %s3244_s20, %s1571_s13 }
  0x9e   : > { %p1572_p6 = scmp.ne.s32.totalorder %s3245_s2, 0 }
  0x9f   : > { %v392_v0 = vld [vmem:[%s2551_s18] sm:$0xff] (!%p1572_p6)  ;;  %v2587_v1 = vstv (!%p1572_p6), %s2573_s6  ;;  %v393_v2 = vld [vmem:[%s2551_s18 + $0x8] sm:$0xff] (!%p1572_p6)  ;;  %v394_v3 = vld [vmem:[%s2551_s18 + $0x10] sm:$0xff] (!%p1572_p6)  ;;  %vm441_vm0 = vcmask (!%p1572_p6), 7168   ;;  %v2230_v10 = vmov (!%p1572_p6), -inf   ;;  %v2231_v11 = vmov (!%p1572_p6), 0.0  }
  0xa0   : > { %391 = sbr.rel (%p1572_p6) target bundleno = 185 (0xb9), region = 52  ;;  %v409_v4 = vmul.f32 (!%p1572_p6), %v2587_v1, %v392_v0  ;;  %v410_v5 = vmul.f32 (!%p1572_p6), %v2587_v1, %v393_v2  ;;  %v411_v6 = vmul.f32 (!%p1572_p6), %v2587_v1, %v394_v3  ;;  %v395_v7 = vld [vmem:[%s2551_s18 + $0x18] sm:$0xff] (!%p1572_p6)  ;;  %v396_v8 = vld [vmem:[%s2551_s18 + $0x20] sm:$0xff] (!%p1572_p6)  ;;  %v397_v9 = vld [vmem:[%s2551_s18 + $0x28] sm:$0xff] (!%p1572_p6)  ;;  %442 = vst.msk [vmem:[#allocation3] sm:$0xff] (!%p1572_p6), %vm441_vm0, %v2230_v10 }
  0xa1   : > { %443 = vst.msk [vmem:[#allocation3 + $0x8] sm:$0xff] (!%p1572_p6), %vm441_vm0, %v2230_v10  ;;  %444 = vst.msk [vmem:[#allocation3 + $0x10] sm:$0xff] (!%p1572_p6), %vm441_vm0, %v2230_v10  ;;  %v412_v12 = vmul.f32 (!%p1572_p6), %v2587_v1, %v395_v7  ;;  %v413_v13 = vmul.f32 (!%p1572_p6), %v2587_v1, %v396_v8  ;;  %v414_v14 = vmul.f32 (!%p1572_p6), %v2587_v1, %v397_v9  ;;  %v398_v15 = vld [vmem:[%s2551_s18 + $0x30] sm:$0xff] (!%p1572_p6)  ;;  %v399_v16 = vld [vmem:[%s2551_s18 + $0x38] sm:$0xff] (!%p1572_p6) }
  0xa2   : > { %445 = vst.msk [vmem:[#allocation3 + $0x18] sm:$0xff] (!%p1572_p6), %vm441_vm0, %v2230_v10  ;;  %446 = vst.msk [vmem:[#allocation3 + $0x20] sm:$0xff] (!%p1572_p6), %vm441_vm0, %v2230_v10  ;;  %v400_v17 = vld [vmem:[%s2551_s18 + $0x40] sm:$0xff] (!%p1572_p6)  ;;  %v415_v18 = vmul.f32 (!%p1572_p6), %v2587_v1, %v398_v15  ;;  %v416_v19 = vmul.f32 (!%p1572_p6), %v2587_v1, %v399_v16  ;;  %v401_v21 = vld [vmem:[%s2551_s18 + $0x48] sm:$0xff] (!%p1572_p6) }
  0xa3   : > { %447 = vst.msk [vmem:[#allocation3 + $0x28] sm:$0xff] (!%p1572_p6), %vm441_vm0, %v2230_v10  ;;  %448 = vst.msk [vmem:[#allocation3 + $0x30] sm:$0xff] (!%p1572_p6), %vm441_vm0, %v2230_v10  ;;  %v417_v20 = vmul.f32 (!%p1572_p6), %v2587_v1, %v400_v17  ;;  %v402_v22 = vld [vmem:[%s2551_s18 + $0x50] sm:$0xff] (!%p1572_p6)  ;;  %v403_v23 = vld [vmem:[%s2551_s18 + $0x58] sm:$0xff] (!%p1572_p6)  ;;  %v418_v24 = vmul.f32 (!%p1572_p6), %v2587_v1, %v401_v21 }
  0xa4   : > { %449 = vst.msk [vmem:[#allocation3 + $0x38] sm:$0xff] (!%p1572_p6), %vm441_vm0, %v2230_v10  ;;  %450 = vst.msk [vmem:[#allocation3 + $0x40] sm:$0xff] (!%p1572_p6), %vm441_vm0, %v2230_v10  ;;  %v419_v25 = vmul.f32 (!%p1572_p6), %v2587_v1, %v402_v22  ;;  %v420_v26 = vmul.f32 (!%p1572_p6), %v2587_v1, %v403_v23  ;;  %v404_v27 = vld [vmem:[%s2551_s18 + $0x60] sm:$0xff] (!%p1572_p6)  ;;  %v405_v28 = vld [vmem:[%s2551_s18 + $0x68] sm:$0xff] (!%p1572_p6) }
  0xa5   : > { %451 = vst.msk [vmem:[#allocation3 + $0x48] sm:$0xff] (!%p1572_p6), %vm441_vm0, %v2230_v10  ;;  %452 = vst.msk [vmem:[#allocation3 + $0x50] sm:$0xff] (!%p1572_p6), %vm441_vm0, %v2230_v10  ;;  %v406_v29 = vld [vmem:[%s2551_s18 + $0x70] sm:$0xff] (!%p1572_p6)  ;;  %v421_v30 = vmul.f32 (!%p1572_p6), %v2587_v1, %v404_v27  ;;  %v422_v31 = vmul.f32 (!%p1572_p6), %v2587_v1, %v405_v28  ;;  %v407_v33 = vld [vmem:[%s2551_s18 + $0x78] sm:$0xff] (!%p1572_p6) }
  0xa6   : > { %453 = vst.msk [vmem:[#allocation3 + $0x58] sm:$0xff] (!%p1572_p6), %vm441_vm0, %v2230_v10  ;;  %454 = vst.msk [vmem:[#allocation3 + $0x60] sm:$0xff] (!%p1572_p6), %vm441_vm0, %v2230_v10  ;;  %v423_v32 = vmul.f32 (!%p1572_p6), %v2587_v1, %v406_v29  ;;  %v424_v34 = vmul.f32 (!%p1572_p6), %v2587_v1, %v407_v33 }
  0xa7   : > { %455 = vst.msk [vmem:[#allocation3 + $0x68] sm:$0xff] %vm441_vm0, %v2230_v10  ;;  %456 = vst.msk [vmem:[#allocation3 + $0x70] sm:$0xff] %vm441_vm0, %v2230_v10 }
  0xa8   : > { %457 = vst.msk [vmem:[#allocation3 + $0x78] sm:$0xff] %vm441_vm0, %v2230_v10  ;;  %458 = vst.msk [vmem:[#allocation4] sm:$0xff] %vm441_vm0, %v2231_v11 }
  0xa9   : > { %459 = vst.msk [vmem:[#allocation4 + $0x8] sm:$0xff] %vm441_vm0, %v2231_v11  ;;  %460 = vst.msk [vmem:[#allocation4 + $0x10] sm:$0xff] %vm441_vm0, %v2231_v11 }
  0xaa   : > { %461 = vst.msk [vmem:[#allocation4 + $0x18] sm:$0xff] %vm441_vm0, %v2231_v11  ;;  %462 = vst.msk [vmem:[#allocation4 + $0x20] sm:$0xff] %vm441_vm0, %v2231_v11 }
  0xab   : > { %463 = vst.msk [vmem:[#allocation4 + $0x28] sm:$0xff] %vm441_vm0, %v2231_v11  ;;  %464 = vst.msk [vmem:[#allocation4 + $0x30] sm:$0xff] %vm441_vm0, %v2231_v11 }
  0xac   : > { %465 = vst.msk [vmem:[#allocation4 + $0x38] sm:$0xff] %vm441_vm0, %v2231_v11  ;;  %466 = vst.msk [vmem:[#allocation4 + $0x40] sm:$0xff] %vm441_vm0, %v2231_v11 }
  0xad   : > { %467 = vst.msk [vmem:[#allocation4 + $0x48] sm:$0xff] %vm441_vm0, %v2231_v11  ;;  %468 = vst.msk [vmem:[#allocation4 + $0x50] sm:$0xff] %vm441_vm0, %v2231_v11 }
  0xae   : > { %469 = vst.msk [vmem:[#allocation4 + $0x58] sm:$0xff] %vm441_vm0, %v2231_v11  ;;  %470 = vst.msk [vmem:[#allocation4 + $0x60] sm:$0xff] %vm441_vm0, %v2231_v11 }
  0xaf   : > { %471 = vst.msk [vmem:[#allocation4 + $0x68] sm:$0xff] %vm441_vm0, %v2231_v11  ;;  %472 = vst.msk [vmem:[#allocation4 + $0x70] sm:$0xff] %vm441_vm0, %v2231_v11 }
  0xb0   : > { %473 = vst.msk [vmem:[#allocation4 + $0x78] sm:$0xff] %vm441_vm0, %v2231_v11  ;;  %425 = vst [vmem:[#allocation2] sm:$0xff] %v409_v4 }
  0xb1   : > { %426 = vst [vmem:[#allocation2 + $0x8] sm:$0xff] %v410_v5  ;;  %427 = vst [vmem:[#allocation2 + $0x10] sm:$0xff] %v411_v6 }
  0xb2   : > { %428 = vst [vmem:[#allocation2 + $0x18] sm:$0xff] %v412_v12  ;;  %429 = vst [vmem:[#allocation2 + $0x20] sm:$0xff] %v413_v13 }
  0xb3   : > { %430 = vst [vmem:[#allocation2 + $0x28] sm:$0xff] %v414_v14  ;;  %431 = vst [vmem:[#allocation2 + $0x30] sm:$0xff] %v415_v18 }
  0xb4   : > { %432 = vst [vmem:[#allocation2 + $0x38] sm:$0xff] %v416_v19  ;;  %433 = vst [vmem:[#allocation2 + $0x40] sm:$0xff] %v417_v20 }
  0xb5   : > { %434 = vst [vmem:[#allocation2 + $0x48] sm:$0xff] %v418_v24  ;;  %435 = vst [vmem:[#allocation2 + $0x50] sm:$0xff] %v419_v25 }
  0xb6   : > { %436 = vst [vmem:[#allocation2 + $0x58] sm:$0xff] %v420_v26  ;;  %437 = vst [vmem:[#allocation2 + $0x60] sm:$0xff] %v421_v30 }
  0xb7   : > { %438 = vst [vmem:[#allocation2 + $0x68] sm:$0xff] %v422_v31  ;;  %439 = vst [vmem:[#allocation2 + $0x70] sm:$0xff] %v423_v32 }
  0xb8   : > { %440 = vst [vmem:[#allocation2 + $0x78] sm:$0xff] %v424_v34 }
  0xb9 PF: > { %v490_v35 = vld [vmem:[%s2565_s15] sm:$0xff]  ;;  %v491_v36 = vld [vmem:[%s2565_s15 + $0x8] sm:$0xff]  ;;  %v492_v37 = vld [vmem:[%s2565_s15 + $0x10] sm:$0xff]  ;;  %s3246_s1 = sld [smem:[#allocation21_spill]]  ;;  %vm971_vm1 = vcmask 7168  }
  0xba   : > { %v1671_v38 = vpack.c.bf16 %v491_v36, %v490_v35  ;;  %v493_v39 = vld [vmem:[%s2565_s15 + $0x18] sm:$0xff]  ;;  %v474_v41 = vld [vmem:[#allocation2] sm:$0xff]  ;;  %v495_v44 = vld [vmem:[%s2565_s15 + $0x28] sm:$0xff] }
  0xbb   : > { %v1675_v40 = vpack.c.bf16 %v493_v39, %v492_v37  ;;  %v482_v42 = vld [vmem:[#allocation2 + $0x40] sm:$0xff]  ;;  %1647 = vmatprep.mubr.f32.mxu0 %v474_v41  ;;  %v496_v46 = vld [vmem:[%s2565_s15 + $0x30] sm:$0xff]  ;;  %v497_v47 = vld [vmem:[%s2565_s15 + $0x38] sm:$0xff] }
  0xbc   : > { %1672 = vmatprep.subr.bf16.mxu0 %v1671_v38  ;;  %1703 = vmatprep.subr.bf16.mxu1 %v1671_v38  ;;  %v494_v43 = vld [vmem:[%s2565_s15 + $0x20] sm:$0xff]  ;;  %v1683_v48 = vpack.c.bf16 %v497_v47, %v496_v46  ;;  %v499_v50 = vld [vmem:[%s2565_s15 + $0x48] sm:$0xff]  ;;  %v500_v52 = vld [vmem:[%s2565_s15 + $0x50] sm:$0xff] }
  0xbd   : > { %1674 = vmatpush3.bf16.xpose.msra.mxu0 %v1671_v38  ;;  %1711 = vmatpush3.bf16.xpose.msra.mxu1 %v1671_v38  ;;  %v1679_v45 = vpack.c.bf16 %v495_v44, %v494_v43  ;;  %v498_v49 = vld [vmem:[%s2565_s15 + $0x40] sm:$0xff]  ;;  %v501_v53 = vld [vmem:[%s2565_s15 + $0x58] sm:$0xff]  ;;  %v503_v56 = vld [vmem:[%s2565_s15 + $0x68] sm:$0xff] }
  0xbe   : > { %1676 = vmatprep.subr.bf16.mxu0 %v1675_v40  ;;  %1704 = vmatprep.subr.bf16.mxu1 %v1675_v40  ;;  %v1687_v51 = vpack.c.bf16 %v499_v50, %v498_v49  ;;  %v1691_v54 = vpack.c.bf16 %v501_v53, %v500_v52  ;;  %v502_v55 = vld [vmem:[%s2565_s15 + $0x60] sm:$0xff]  ;;  %v504_v58 = vld [vmem:[%s2565_s15 + $0x70] sm:$0xff]  ;;  %v505_v59 = vld [vmem:[%s2565_s15 + $0x78] sm:$0xff] }
  0xbf   : > { %1659 = vmatprep.mubr.f32.mxu1 %v482_v42  ;;  %v1695_v57 = vpack.c.bf16 %v503_v56, %v502_v55  ;;  %v1699_v60 = vpack.c.bf16 %v505_v59, %v504_v58  ;;  %v475_v61 = vld [vmem:[#allocation2 + $0x8] sm:$0xff]  ;;  %v476_v63 = vld [vmem:[#allocation2 + $0x10] sm:$0xff]  ;;  %v477_v1 = vld [vmem:[#allocation2 + $0x18] sm:$0xff]  ;;  %v2232_v42 = vmov 0   ;;  %s1094_s4 = scalar_lea.vmem %s2580_s23, %s3246_s1 [#allocation12]  ;;  %s1096_s17 = scalar_lea.vmem %s2582_s10, %s3246_s1 [#allocation13] }
  0xc0   : > { %v483_v62 = vld [vmem:[#allocation2 + $0x48] sm:$0xff]  ;;  %v484_v0 = vld [vmem:[#allocation2 + $0x50] sm:$0xff]  ;;  %v485_v2 = vld [vmem:[#allocation2 + $0x58] sm:$0xff]  ;;  %1842 = vset.pattern.permute.xlu0 %v2232_v42  ;;  %1841 = vset.pattern.permute.xlu1 %v2232_v42  ;;  %p1573_p4 = scmp.ne.s32.totalorder %s3246_s1, 1 }
  0xc1   : > { %v478_v3 = vld [vmem:[#allocation2 + $0x20] sm:$0xff]  ;;  %v479_v5 = vld [vmem:[#allocation2 + $0x28] sm:$0xff]  ;;  %v480_v7 = vld [vmem:[#allocation2 + $0x30] sm:$0xff] }
  0xc2   : > { %v486_v4 = vld [vmem:[#allocation2 + $0x60] sm:$0xff]  ;;  %v487_v6 = vld [vmem:[#allocation2 + $0x68] sm:$0xff]  ;;  %v488_v8 = vld [vmem:[#allocation2 + $0x70] sm:$0xff] }
  0xc3   : > { %v481_v9 = vld [vmem:[#allocation2 + $0x38] sm:$0xff] }
  0xc4   : > { %v489_v10 = vld [vmem:[#allocation2 + $0x78] sm:$0xff] }
  0xc5   : > { %1678 = vmatpush3.bf16.xpose.msra.mxu0 %v1675_v40  ;;  %1712 = vmatpush3.bf16.xpose.msra.mxu1 %v1675_v40 }
  0xc6   : > { %1680 = vmatprep.subr.bf16.mxu0 %v1679_v45  ;;  %1705 = vmatprep.subr.bf16.mxu1 %v1679_v45 }
  0xcd   : > { %1682 = vmatpush3.bf16.xpose.msra.mxu0 %v1679_v45  ;;  %1713 = vmatpush3.bf16.xpose.msra.mxu1 %v1679_v45 }
  0xce   : > { %1684 = vmatprep.subr.bf16.mxu0 %v1683_v48  ;;  %1706 = vmatprep.subr.bf16.mxu1 %v1683_v48 }
  0xd5   : > { %1686 = vmatpush3.bf16.xpose.msra.mxu0 %v1683_v48  ;;  %1714 = vmatpush3.bf16.xpose.msra.mxu1 %v1683_v48 }
  0xd6   : > { %1688 = vmatprep.subr.bf16.mxu0 %v1687_v51  ;;  %1707 = vmatprep.subr.bf16.mxu1 %v1687_v51 }
  0xdd   : > { %1690 = vmatpush3.bf16.xpose.msra.mxu0 %v1687_v51  ;;  %1715 = vmatpush3.bf16.xpose.msra.mxu1 %v1687_v51 }
  0xde   : > { %1692 = vmatprep.subr.bf16.mxu0 %v1691_v54  ;;  %1708 = vmatprep.subr.bf16.mxu1 %v1691_v54 }
  0xe5   : > { %1694 = vmatpush3.bf16.xpose.msra.mxu0 %v1691_v54  ;;  %1716 = vmatpush3.bf16.xpose.msra.mxu1 %v1691_v54 }
  0xe6   : > { %1696 = vmatprep.subr.bf16.mxu0 %v1695_v57  ;;  %1709 = vmatprep.subr.bf16.mxu1 %v1695_v57 }
  0xed   : > { %1698 = vmatpush3.bf16.xpose.msra.mxu0 %v1695_v57  ;;  %1717 = vmatpush3.bf16.xpose.msra.mxu1 %v1695_v57 }
  0xee   : > { %1700 = vmatprep.subr.bf16.mxu0 %v1699_v60  ;;  %1710 = vmatprep.subr.bf16.mxu1 %v1699_v60 }
  0xf5   : > { %1702 = vmatpush3.bf16.xpose.msra.mxu0 %v1699_v60  ;;  %1718 = vmatpush3.bf16.xpose.msra.mxu1 %v1699_v60 }
  0xfc   : > { %1648 = vmatmul.mubr.f32.vlgmr.msra.gmra.mrb[0].mxu0 %v475_v61  ;;  %1660 = vmatmul.mubr.f32.vlgmr.msra.gmra.mrb[0].mxu1 %v483_v62 }
  0xfd   : > { %1650 = vmatprep.mubr.f32.mxu0 %v476_v63  ;;  %1662 = vmatprep.mubr.f32.mxu1 %v484_v0 }
 0x100   : > { %1651 = vmatmul.mubr.f32.gmra.mrb[2].mxu0 %v477_v1  ;;  %1663 = vmatmul.mubr.f32.gmra.mrb[2].mxu1 %v485_v2 }
 0x101   : > { %1653 = vmatprep.mubr.f32.mxu0 %v478_v3  ;;  %1665 = vmatprep.mubr.f32.mxu1 %v486_v4 }
 0x104   : > { %1654 = vmatmul.mubr.f32.gmra.mrb[4].mxu0 %v479_v5  ;;  %1666 = vmatmul.mubr.f32.gmra.mrb[4].mxu1 %v487_v6 }
 0x105   : > { %1656 = vmatprep.mubr.f32.mxu0 %v480_v7  ;;  %1668 = vmatprep.mubr.f32.mxu1 %v488_v8 }
 0x108   : > { %1657 = vmatmul.mubr.f32.gmra.mrb[6].mxu0 %v481_v9  ;;  %1669 = vmatmul.mubr.f32.gmra.mrb[6].mxu1 %v489_v10 }
 0x1cf   : > { %v2668_v11 = vpop.f32.mrb[0].mxu0  ;;  %v2670_v12 = vpop.f32.mrb[0].mxu1 }
 0x1d0   : > { %685 = vmax.xlane.f32.xlu1 %v2670_v12  ;;  %669 = vmax.xlane.f32.xlu0 %v2668_v11  ;;  %v2674_v13 = vpop.f32.mrb[1].mxu0  ;;  %v2676_v14 = vpop.f32.mrb[1].mxu1 }
 0x1d3   : > { %v2678_v15 = vpop.f32.mrb[2].mxu0  ;;  %v2680_v16 = vpop.f32.mrb[2].mxu1 }
 0x1d4   : > { %667 = vmax.xlane.f32.xlu0 %v2674_v13  ;;  %673 = vmax.xlane.f32.xlu1 %v2678_v15  ;;  %v2684_v17 = vpop.f32.mrb[3].mxu0  ;;  %v2686_v18 = vpop.f32.mrb[3].mxu1 }
 0x1d7   : > { %v2688_v19 = vpop.f32.mrb[4].mxu0  ;;  %v2690_v20 = vpop.f32.mrb[4].mxu1 }
 0x1d8   : > { %v1005_v21 = vmax.f32 %v2668_v11, %v2688_v19  ;;  %683 = vmax.xlane.f32.xlu0 %v2676_v14  ;;  %689 = vmax.xlane.f32.xlu1 %v2680_v16  ;;  %v2696_v22 = vpop.f32.mrb[5].mxu0  ;;  %v2698_v23 = vpop.f32.mrb[5].mxu1 }
 0x1d9   : > { %v1004_v24 = vmax.f32 %v2674_v13, %v2696_v22 }
 0x1da   : > { %v1009_v25 = vmax.f32 %v1005_v21, %v2670_v12 }
 0x1db   : > { %v2703_v26 = vpop.f32.mrb[6].mxu0  ;;  %v1008_v27 = vmax.f32 %v1004_v24, %v2676_v14  ;;  %v2706_v28 = vpop.f32.mrb[6].mxu1 }
 0x1dc   : > { %v1007_v29 = vmax.f32 %v2678_v15, %v2703_v26  ;;  %v1013_v30 = vmax.f32 %v1009_v25, %v2690_v20  ;;  %687 = vmax.xlane.f32.xlu0 %v2686_v18  ;;  %671 = vmax.xlane.f32.xlu1 %v2684_v17  ;;  %v2713_v31 = vpop.f32.mrb[7].mxu0  ;;  %v2715_v32 = vpop.f32.mrb[7].mxu1 }
 0x1dd   : > { %v1012_v33 = vmax.f32 %v1008_v27, %v2698_v23  ;;  %v1006_v34 = vmax.f32 %v2684_v17, %v2713_v31 }
 0x1de   : > { %v1011_v35 = vmax.f32 %v1007_v29, %v2680_v16 }
 0x1df   : > { %v1016_v36 = vmax.f32 %v1012_v33, %v1013_v30  ;;  %v1010_v37 = vmax.f32 %v1006_v34, %v2686_v18 }
 0x1e0   : > { %v1015_v38 = vmax.f32 %v1011_v35, %v2706_v28  ;;  %677 = vmax.xlane.f32.xlu1 %v2688_v19  ;;  %675 = vmax.xlane.f32.xlu0 %v2696_v22 }
 0x1e1   : > { %v1014_v39 = vmax.f32 %v1010_v37, %v2715_v32 }
 0x1e3   : > { %v1017_v40 = vmax.f32 %v1014_v39, %v1015_v38 }
 0x1e4   : > { %693 = vmax.xlane.f32.xlu1 %v2690_v20  ;;  %691 = vmax.xlane.f32.xlu0 %v2698_v23 }
 0x1e5   : > { %v1018_v41 = vmax.f32 %v1016_v36, %v1017_v40 }
 0x1e7   : > { %v1019_v43 = vrot.slane %v1018_v41, 4 }
 0x1e8   : > { %681 = vmax.xlane.f32.xlu1 %v2703_v26  ;;  %679 = vmax.xlane.f32.xlu0 %v2713_v31 }
 0x1e9   : > { %v1020_v44 = vmax.f32 %v1018_v41, %v1019_v43 }
 0x1eb   : > { %v1021_v45 = vrot.slane %v1020_v44, 2 }
 0x1ec   : > { %697 = vmax.xlane.f32.xlu1 %v2706_v28  ;;  %695 = vmax.xlane.f32.xlu0 %v2715_v32 }
 0x1ed   : > { %v1022_v46 = vmax.f32 %v1020_v44, %v1021_v45 }
 0x1ef   : > { %v1023_v47 = vrot.slane %v1022_v46, 1 }
 0x1f1   : > { %v2734_v48 = vmax.f32 %v1022_v46, %v1023_v47 }
 0x1f3   : > { %v1025_v49 = vsub.f32 %v2674_v13, %v2734_v48  ;;  %v1026_v50 = vsub.f32 %v2668_v11, %v2734_v48  ;;  %v1027_v51 = vsub.f32 %v2684_v17, %v2734_v48  ;;  %v1028_v52 = vsub.f32 %v2678_v15, %v2734_v48  ;;  %1095 = vst [vmem:[%s1094_s4] sm:$0x1] %v2734_v48 }
 0x1f4   : > { %v1029_v53 = vsub.f32 %v2696_v22, %v2734_v48  ;;  %v1030_v54 = vsub.f32 %v2688_v19, %v2734_v48  ;;  %v1031_v55 = vsub.f32 %v2713_v31, %v2734_v48  ;;  %v1032_v56 = vsub.f32 %v2703_v26, %v2734_v48 }
 0x1f5   : > { %v1033_v57 = vsub.f32 %v2676_v14, %v2734_v48  ;;  %v1034_v58 = vsub.f32 %v2670_v12, %v2734_v48  ;;  %v1035_v59 = vsub.f32 %v2686_v18, %v2734_v48  ;;  %v1036_v60 = vsub.f32 %v2680_v16, %v2734_v48 }
 0x1f6   : > { %v1037_v61 = vsub.f32 %v2698_v23, %v2734_v48  ;;  %v1038_v62 = vsub.f32 %v2690_v20, %v2734_v48  ;;  %v1039_v63 = vsub.f32 %v2715_v32, %v2734_v48  ;;  %v1040_v0 = vsub.f32 %v2706_v28, %v2734_v48 }
 0x1f7   : > { %v1041_v1 = vmul.f32 1.442695, %v1025_v49  ;;  %v1043_v2 = vmul.f32 1.442695, %v1026_v50  ;;  %v1045_v3 = vmul.f32 1.442695, %v1027_v51 }
 0x1f8   : > { %v1047_v4 = vmul.f32 1.442695, %v1028_v52  ;;  %v1049_v5 = vmul.f32 1.442695, %v1029_v53  ;;  %v1051_v6 = vmul.f32 1.442695, %v1030_v54 }
 0x1f9   : > { %1843 = vpow2.f32 %v1041_v1  ;;  %v1053_v7 = vmul.f32 1.442695, %v1031_v55  ;;  %v1055_v8 = vmul.f32 1.442695, %v1032_v56  ;;  %v1057_v21 = vmul.f32 1.442695, %v1033_v57 }
 0x1fa   : > { %1845 = vpow2.f32 %v1043_v2  ;;  %v1059_v27 = vmul.f32 1.442695, %v1034_v58  ;;  %v1061_v33 = vmul.f32 1.442695, %v1035_v59  ;;  %v1063_v36 = vmul.f32 1.442695, %v1036_v60 }
 0x1fb   : > { %1847 = vpow2.f32 %v1045_v3  ;;  %v1065_v39 = vmul.f32 1.442695, %v1037_v61  ;;  %v1067_v42 = vmul.f32 1.442695, %v1038_v62  ;;  %v1069_v45 = vmul.f32 1.442695, %v1039_v63 }
 0x1fc   : > { %1849 = vpow2.f32 %v1047_v4  ;;  %v1071_v48 = vmul.f32 1.442695, %v1040_v0 }
 0x1fd   : > { %1851 = vpow2.f32 %v1049_v5 }
 0x1fe   : > { %1853 = vpow2.f32 %v1051_v6  ;;  %v2771_v6 = vld [vmem:[#allocation3 + $0x48] sm:$0xff] }
 0x1ff   : > { %1855 = vpow2.f32 %v1053_v7  ;;  %v2773_v7 = vld [vmem:[#allocation3 + $0x8] sm:$0xff] }
 0x200   : > { %1857 = vpow2.f32 %v1055_v8 }
 0x201   : > { %1859 = vpow2.f32 %v1057_v21 }
 0x202   : > { %1861 = vpow2.f32 %v1059_v27 }
 0x203   : > { %v1844_v9 = vpop.eup %1843  ;;  %1863 = vpow2.f32 %v1061_v33 }
 0x204   : > { %v1846_v10 = vpop.eup %1845  ;;  %1865 = vpow2.f32 %v1063_v36  ;;  %v2801_v36 = vld [vmem:[#allocation3 + $0x40] sm:$0xff] }
 0x205   : > { %v1073_v24 = vadd.f32 %v1846_v10, %v1844_v9  ;;  %v1848_v25 = vpop.eup %1847  ;;  %1867 = vpow2.f32 %v1065_v39 }
 0x206   : > { %v1850_v30 = vpop.eup %1849  ;;  %1869 = vpow2.f32 %v1067_v42 }
 0x207   : > { %v1074_v29 = vadd.f32 %v1848_v25, %v1073_v24  ;;  %v1852_v35 = vpop.eup %1851  ;;  %1871 = vpow2.f32 %v1069_v45  ;;  %v2781_v24 = vld [vmem:[#allocation3] sm:$0xff]  ;;  %v2783_v25 = vld [vmem:[#allocation3 + $0x18] sm:$0xff]  ;;  %v2822_v45 = vld [vmem:[#allocation3 + $0x10] sm:$0xff] }
 0x208   : > { %v1854_v38 = vpop.eup %1853  ;;  %1873 = vpow2.f32 %v1071_v48 }
 0x209   : > { %v1075_v34 = vadd.f32 %v1850_v30, %v1074_v29  ;;  %v1856_v41 = vpop.eup %1855 }
 0x20a   : > { %v1858_v44 = vpop.eup %1857 }
 0x20b   : > { %v1076_v37 = vadd.f32 %v1852_v35, %v1075_v34  ;;  %v1860_v47 = vpop.eup %1859 }
 0x20c   : > { %v1862_v50 = vpop.eup %1861 }
 0x20d   : > { %v1077_v40 = vadd.f32 %v1854_v38, %v1076_v37  ;;  %v1864_v52 = vpop.eup %1863  ;;  %v2803_v37 = vld [vmem:[#allocation3 + $0x58] sm:$0xff] }
 0x20e   : > { %v1866_v54 = vpop.eup %1865 }
 0x20f   : > { %v1078_v43 = vadd.f32 %v1856_v41, %v1077_v40  ;;  %v1868_v56 = vpop.eup %1867 }
 0x210   : > { %v1870_v58 = vpop.eup %1869 }
 0x211   : > { %v1079_v46 = vadd.f32 %v1858_v44, %v1078_v43  ;;  %v1872_v60 = vpop.eup %1871  ;;  %v2820_v44 = vld [vmem:[#allocation3 + $0x50] sm:$0xff] }
 0x212   : > { %v1874_v62 = vpop.eup %1873 }
 0x213   : > { %v1080_v49 = vadd.f32 %v1860_v47, %v1079_v46 }
 0x215   : > { %v1081_v51 = vadd.f32 %v1862_v50, %v1080_v49 }
 0x217   : > { %v1082_v53 = vadd.f32 %v1864_v52, %v1081_v51  ;;  %v2840_v52 = vld [vmem:[#allocation3 + $0x28] sm:$0xff] }
 0x219   : > { %v1083_v55 = vadd.f32 %v1866_v54, %v1082_v53  ;;  %v2842_v53 = vld [vmem:[#allocation3 + $0x20] sm:$0xff] }
 0x21b   : > { %v1084_v57 = vadd.f32 %v1868_v56, %v1083_v55 }
 0x21d   : > { %v1085_v59 = vadd.f32 %v1870_v58, %v1084_v57 }
 0x21f   : > { %v1086_v61 = vadd.f32 %v1872_v60, %v1085_v59  ;;  %v2859_v60 = vld [vmem:[#allocation3 + $0x68] sm:$0xff] }
 0x221   : > { %v1087_v63 = vadd.f32 %v1874_v62, %v1086_v61  ;;  %v2861_v61 = vld [vmem:[#allocation3 + $0x60] sm:$0xff] }
 0x223   : > { %v1088_v0 = vrot.slane %v1087_v63, 4 }
 0x225   : > { %v1089_v1 = vadd.f32 %v1088_v0, %v1087_v63 }
 0x227   : > { %v1090_v2 = vrot.slane %v1089_v1, 2 }
 0x229   : > { %v1091_v3 = vadd.f32 %v1090_v2, %v1089_v1 }
 0x22b   : > { %v1092_v4 = vrot.slane %v1091_v3, 1 }
 0x22d   : > { %v1093_v5 = vadd.f32 %v1092_v4, %v1091_v3  ;;  %v2878_v4 = vld [vmem:[#allocation3 + $0x38] sm:$0xff] }
 0x22f   : > { %1097 = vst [vmem:[%s1096_s17] sm:$0x1] %v1093_v5  ;;  %v2880_v5 = vld [vmem:[#allocation3 + $0x30] sm:$0xff] }
 0x25d   : > { %v686_v8 = vpop.xlane.xlu1 %685  ;;  %v670_v9 = vpop.xlane.xlu0 %669 }
 0x25e   : > { %v2776_v10 = vmax.f32 %v2771_v6, %v686_v8  ;;  %v2779_v21 = vmax.f32 %v2773_v7, %v670_v9 }
 0x260   : > { %997 = vst.msk [vmem:[#allocation3 + $0x48] sm:$0xff] %vm971_vm1, %v2776_v10  ;;  %v732_v29 = vsub.f32 %v2773_v7, %v2779_v21  ;;  %989 = vst.msk [vmem:[#allocation3 + $0x8] sm:$0xff] %vm971_vm1, %v2779_v21  ;;  %802 = vperm.xlu1 %1841, %v2779_v21   ;;  %842 = vperm.xlu0 %1842, %v2776_v10  }
 0x261   : > { %v668_v30 = vpop.xlane.xlu0 %667  ;;  %v674_v33 = vpop.xlane.xlu1 %673 }
 0x262   : > { %v2796_v34 = vmax.f32 %v2781_v24, %v668_v30  ;;  %v2799_v35 = vmax.f32 %v2783_v25, %v674_v33 }
 0x264   : > { %988 = vst.msk [vmem:[#allocation3] sm:$0xff] %vm971_vm1, %v2796_v34  ;;  %991 = vst.msk [vmem:[#allocation3 + $0x18] sm:$0xff] %vm971_vm1, %v2799_v35  ;;  %797 = vperm.xlu0 %1842, %v2796_v34  }
 0x265   : > { %v684_v40 = vpop.xlane.xlu0 %683  ;;  %v690_v41 = vpop.xlane.xlu1 %689 }
 0x266   : > { %v2815_v42 = vmax.f32 %v2801_v36, %v684_v40  ;;  %v2818_v43 = vmax.f32 %v2803_v37, %v690_v41 }
 0x268   : > { %996 = vst.msk [vmem:[#allocation3 + $0x40] sm:$0xff] %vm971_vm1, %v2815_v42  ;;  %999 = vst.msk [vmem:[#allocation3 + $0x58] sm:$0xff] %vm971_vm1, %v2818_v43  ;;  %837 = vperm.xlu1 %1841, %v2815_v42   ;;  %852 = vperm.xlu0 %1842, %v2818_v43  }
 0x269   : > { %v688_v48 = vpop.xlane.xlu0 %687  ;;  %v672_v49 = vpop.xlane.xlu1 %671 }
 0x26a   : > { %v2835_v50 = vmax.f32 %v2820_v44, %v688_v48  ;;  %v2838_v51 = vmax.f32 %v2822_v45, %v672_v49  ;;  %v2898_v48 = vld [vmem:[#allocation3 + $0x78] sm:$0xff]  ;;  %v2900_v49 = vld [vmem:[#allocation3 + $0x70] sm:$0xff] }
 0x26c   : > { %998 = vst.msk [vmem:[#allocation3 + $0x50] sm:$0xff] %vm971_vm1, %v2835_v50  ;;  %990 = vst.msk [vmem:[#allocation3 + $0x10] sm:$0xff] %vm971_vm1, %v2838_v51  ;;  %812 = vperm.xlu1 %1841, %v2799_v35  }
 0x26d   : > { %v678_v56 = vpop.xlane.xlu1 %677  ;;  %v676_v57 = vpop.xlane.xlu0 %675 }
 0x26e   : > { %v2854_v58 = vmax.f32 %v2840_v52, %v678_v56  ;;  %v2857_v59 = vmax.f32 %v2842_v53, %v676_v57 }
 0x270   : > { %993 = vst.msk [vmem:[#allocation3 + $0x28] sm:$0xff] %vm971_vm1, %v2854_v58  ;;  %807 = vperm.xlu1 %1841, %v2838_v51   ;;  %992 = vst.msk [vmem:[#allocation3 + $0x20] sm:$0xff] %vm971_vm1, %v2857_v59 }
 0x271   : > { %v694_v0 = vpop.xlane.xlu1 %693  ;;  %v692_v1 = vpop.xlane.xlu0 %691 }
 0x272   : > { %v2873_v2 = vmax.f32 %v2859_v60, %v694_v0  ;;  %v2876_v3 = vmax.f32 %v2861_v61, %v692_v1 }
 0x274   : > { %1001 = vst.msk [vmem:[#allocation3 + $0x68] sm:$0xff] %vm971_vm1, %v2873_v2  ;;  %847 = vperm.xlu1 %1841, %v2835_v50   ;;  %862 = vperm.xlu0 %1842, %v2873_v2   ;;  %1000 = vst.msk [vmem:[#allocation3 + $0x60] sm:$0xff] %vm971_vm1, %v2876_v3 }
 0x275   : > { %v682_v30 = vpop.xlane.xlu1 %681  ;;  %v680_v33 = vpop.xlane.xlu0 %679 }
 0x276   : > { %v2893_v40 = vmax.f32 %v2878_v4, %v682_v30  ;;  %v2896_v41 = vmax.f32 %v2880_v5, %v680_v33 }
 0x278   : > { %995 = vst.msk [vmem:[#allocation3 + $0x38] sm:$0xff] %vm971_vm1, %v2893_v40  ;;  %822 = vperm.xlu1 %1841, %v2854_v58   ;;  %994 = vst.msk [vmem:[#allocation3 + $0x30] sm:$0xff] %vm971_vm1, %v2896_v41 }
 0x279   : > { %v698_v0 = vpop.xlane.xlu1 %697  ;;  %v696_v1 = vpop.xlane.xlu0 %695 }
 0x27a   : > { %v2912_v30 = vmax.f32 %v2898_v48, %v698_v0  ;;  %v2915_v33 = vmax.f32 %v2900_v49, %v696_v1 }
 0x27c   : > { %1003 = vst.msk [vmem:[#allocation3 + $0x78] sm:$0xff] %vm971_vm1, %v2912_v30  ;;  %817 = vperm.xlu1 %1841, %v2857_v59   ;;  %872 = vperm.xlu0 %1842, %v2912_v30   ;;  %1002 = vst.msk [vmem:[#allocation3 + $0x70] sm:$0xff] %vm971_vm1, %v2915_v33 }
 0x280   : > { %857 = vperm.xlu1 %1841, %v2876_v3  }
 0x284   : > { %832 = vperm.xlu1 %1841, %v2893_v40  }
 0x288   : > { %827 = vperm.xlu1 %1841, %v2896_v41  }
 0x28c   : > { %867 = vperm.xlu1 %1841, %v2915_v33  }
 0x2df   : > { %v803_v0 = vpop.permute.xlu1 %802  ;;  %v843_v1 = vpop.permute.xlu0 %842 }
 0x2e0   : > { %v876_v56 = vsub.f32 %v2668_v11, %v803_v0  ;;  %v884_v9 = vsub.f32 %v2670_v12, %v843_v1 }
 0x2e2   : > { %v893_v8 = vmul.f32 1.442695, %v876_v56  ;;  %v909_v63 = vmul.f32 1.442695, %v884_v9 }
 0x2e3   : > { %v798_v57 = vpop.permute.xlu0 %797 }
 0x2e4   : > { %1875 = vpow2.f32 %v893_v8  ;;  %v875_v62 = vsub.f32 %v2674_v13, %v798_v57 }
 0x2e5   : > { %1877 = vpow2.f32 %v909_v63 }
 0x2e6   : > { %v891_v54 = vmul.f32 1.442695, %v875_v62 }
 0x2e7   : > { %v838_v55 = vpop.permute.xlu1 %837  ;;  %v853_v39 = vpop.permute.xlu0 %852 }
 0x2e8   : > { %1879 = vpow2.f32 %v891_v54  ;;  %v883_v47 = vsub.f32 %v2676_v14, %v838_v55  ;;  %v886_v38 = vsub.f32 %v2680_v16, %v853_v39 }
 0x2ea   : > { %v907_v46 = vmul.f32 1.442695, %v883_v47  ;;  %v913_v8 = vmul.f32 1.442695, %v886_v38 }
 0x2eb   : > { %v813_v27 = vpop.permute.xlu1 %812 }
 0x2ec   : > { %1881 = vpow2.f32 %v907_v46  ;;  %v878_v11 = vsub.f32 %v2678_v15, %v813_v27 }
 0x2ee   : > { %v1876_v12 = vpop.eup %1875  ;;  %v897_v9 = vmul.f32 1.442695, %v878_v11 }
 0x2ef   : > { %v1878_v56 = vpop.eup %1877  ;;  %v808_v0 = vpop.permute.xlu1 %807  ;;  %925 = vadd.xlane.f32.xlu0 %v1876_v12 }
 0x2f0   : > { %1883 = vpow2.f32 %v897_v9  ;;  %v877_v13 = vsub.f32 %v2684_v17, %v808_v0  ;;  %941 = vadd.xlane.f32.xlu1 %v1878_v56 }
 0x2f1   : > { %1885 = vpow2.f32 %v913_v8 }
 0x2f2   : > { %v1880_v54 = vpop.eup %1879  ;;  %v895_v14 = vmul.f32 1.442695, %v877_v13 }
 0x2f3   : > { %v848_v47 = vpop.permute.xlu1 %847  ;;  %v863_v39 = vpop.permute.xlu0 %862 }
 0x2f4   : > { %1887 = vpow2.f32 %v895_v14  ;;  %v885_v16 = vsub.f32 %v2686_v18, %v848_v47  ;;  %923 = vadd.xlane.f32.xlu1 %v1880_v54  ;;  %v888_v46 = vsub.f32 %v2690_v20, %v863_v39 }
 0x2f6   : > { %v1882_v15 = vpop.eup %1881  ;;  %v911_v27 = vmul.f32 1.442695, %v885_v16  ;;  %v917_v63 = vmul.f32 1.442695, %v888_v46 }
 0x2f7   : > { %v823_v38 = vpop.permute.xlu1 %822  ;;  %939 = vadd.xlane.f32.xlu0 %v1882_v15 }
 0x2f8   : > { %1889 = vpow2.f32 %v911_v27  ;;  %v880_v55 = vsub.f32 %v2688_v19, %v823_v38 }
 0x2fa   : > { %v1884_v17 = vpop.eup %1883  ;;  %v901_v62 = vmul.f32 1.442695, %v880_v55 }
 0x2fb   : > { %v818_v57 = vpop.permute.xlu1 %817  ;;  %929 = vadd.xlane.f32.xlu1 %v1884_v17  ;;  %v1886_v18 = vpop.eup %1885 }
 0x2fc   : > { %1891 = vpow2.f32 %v901_v62  ;;  %v879_v1 = vsub.f32 %v2696_v22, %v818_v57  ;;  %v873_v20 = vpop.permute.xlu0 %872  ;;  %v3247_v57 = vsub.f32 %v2771_v6, %v2776_v10  ;;  %v3251_v10 = vsub.f32 %v2803_v37, %v2818_v43 }
 0x2fd   : > { %1893 = vpow2.f32 %v917_v63  ;;  %v890_v0 = vsub.f32 %v2706_v28, %v873_v20  ;;  %v749_v63 = vmul.f32 1.442695, %v732_v29  ;;  %v716_v29 = vld [vmem:[#allocation4 + $0x8] sm:$0xff] }
 0x2fe   : > { %v1888_v11 = vpop.eup %1887  ;;  %v899_v12 = vmul.f32 1.442695, %v879_v1  ;;  %v3248_v1 = vsub.f32 %v2781_v24, %v2796_v34  ;;  %v769_v20 = vmul.f32 1.442695, %v3251_v10  ;;  %v3252_v24 = vsub.f32 %v2822_v45, %v2838_v51  ;;  %v723_v51 = vld [vmem:[#allocation4 + $0x40] sm:$0xff] }
 0x2ff   : > { %v858_v9 = vpop.permute.xlu1 %857  ;;  %927 = vadd.xlane.f32.xlu0 %v1888_v11  ;;  %945 = vadd.xlane.f32.xlu1 %v1886_v18  ;;  %v921_v47 = vmul.f32 1.442695, %v890_v0  ;;  %v3249_v11 = vsub.f32 %v2801_v36, %v2815_v42  ;;  %v715_v0 = vld [vmem:[#allocation4] sm:$0xff] }
 0x300   : > { %1895 = vpow2.f32 %v899_v12  ;;  %v887_v56 = vsub.f32 %v2698_v23, %v858_v9  ;;  %v747_v18 = vmul.f32 1.442695, %v3248_v1  ;;  %v3250_v9 = vsub.f32 %v2783_v25, %v2799_v35  ;;  %v725_v1 = vld [vmem:[#allocation4 + $0x50] sm:$0xff] }
 0x301   : > { %v763_v12 = vmul.f32 1.442695, %v3249_v11  ;;  %v751_v34 = vmul.f32 1.442695, %v3252_v24 }
 0x302   : > { %v1890_v19 = vpop.eup %1889  ;;  %v915_v8 = vmul.f32 1.442695, %v887_v56  ;;  %v753_v7 = vmul.f32 1.442695, %v3250_v9  ;;  %v724_v56 = vld [vmem:[#allocation4 + $0x48] sm:$0xff] }
 0x303   : > { %v833_v13 = vpop.permute.xlu1 %832  ;;  %943 = vadd.xlane.f32.xlu0 %v1890_v19 }
 0x304   : > { %1897 = vpow2.f32 %v915_v8  ;;  %v882_v22 = vsub.f32 %v2703_v26, %v833_v13  ;;  %v3253_v13 = vsub.f32 %v2820_v44, %v2835_v50  ;;  %v718_v50 = vld [vmem:[#allocation4 + $0x18] sm:$0xff] }
 0x306   : > { %v1892_v54 = vpop.eup %1891  ;;  %v905_v14 = vmul.f32 1.442695, %v882_v22  ;;  %v767_v22 = vmul.f32 1.442695, %v3253_v13 }
 0x307   : > { %v828_v16 = vpop.permute.xlu1 %827  ;;  %933 = vadd.xlane.f32.xlu1 %v1892_v54  ;;  %v1894_v15 = vpop.eup %1893 }
 0x308   : > { %1899 = vpow2.f32 %v905_v14  ;;  %v881_v39 = vsub.f32 %v2713_v31, %v828_v16  ;;  %v3254_v14 = vsub.f32 %v2840_v52, %v2854_v58 }
 0x309   : > { %1901 = vpow2.f32 %v921_v47 }
 0x30a   : > { %v1896_v27 = vpop.eup %1895  ;;  %v903_v23 = vmul.f32 1.442695, %v881_v39  ;;  %v757_v47 = vmul.f32 1.442695, %v3254_v14 }
 0x30b   : > { %931 = vadd.xlane.f32.xlu0 %v1896_v27  ;;  %v868_v46 = vpop.permute.xlu1 %867  ;;  %949 = vadd.xlane.f32.xlu1 %v1894_v15  ;;  %v3255_v27 = vsub.f32 %v2842_v53, %v2857_v59  ;;  %v3257_v53 = vsub.f32 %v2861_v61, %v2876_v3 }
 0x30c   : > { %1903 = vpow2.f32 %v903_v23  ;;  %v889_v28 = vsub.f32 %v2715_v32, %v868_v46  ;;  %v765_v32 = vmul.f32 1.442695, %v3247_v57 }
 0x30d   : > { %v755_v23 = vmul.f32 1.442695, %v3255_v27  ;;  %v771_v59 = vmul.f32 1.442695, %v3257_v53 }
 0x30e   : > { %v1898_v38 = vpop.eup %1897  ;;  %v919_v26 = vmul.f32 1.442695, %v889_v28  ;;  %v3256_v28 = vsub.f32 %v2859_v60, %v2873_v2 }
 0x30f   : > { %947 = vadd.xlane.f32.xlu0 %v1898_v38 }
 0x310   : > { %1905 = vpow2.f32 %v919_v26  ;;  %v773_v38 = vmul.f32 1.442695, %v3256_v28  ;;  %v729_v28 = vld [vmem:[#allocation4 + $0x70] sm:$0xff] }
 0x311   : > { %1907 = vpow2.f32 %v749_v63 }
 0x312   : > { %v1900_v55 = vpop.eup %1899  ;;  %1909 = vpow2.f32 %v765_v32 }
 0x313   : > { %937 = vadd.xlane.f32.xlu1 %v1900_v55  ;;  %v1902_v17 = vpop.eup %1901  ;;  %1911 = vpow2.f32 %v747_v18 }
 0x314   : > { %1913 = vpow2.f32 %v763_v12  ;;  %v3258_v12 = vsub.f32 %v2878_v4, %v2893_v40 }
 0x315   : > { %1915 = vpow2.f32 %v753_v7 }
 0x316   : > { %v1904_v62 = vpop.eup %1903  ;;  %1917 = vpow2.f32 %v769_v20  ;;  %v761_v9 = vmul.f32 1.442695, %v3258_v12  ;;  %v3260_v20 = vsub.f32 %v2898_v48, %v2912_v30  ;;  %v1123_v12 = vld [vmem:[%s2558_s16 + $0x28] sm:$0xff] (!%p1573_p4) }
 0x317   : > { %935 = vadd.xlane.f32.xlu0 %v1904_v62  ;;  %953 = vadd.xlane.f32.xlu1 %v1902_v17  ;;  %1919 = vpow2.f32 %v751_v34  ;;  %v726_v17 = vld [vmem:[#allocation4 + $0x58] sm:$0xff]  ;;  %v717_v62 = vld [vmem:[#allocation4 + $0x10] sm:$0xff] }
 0x318   : > { %1921 = vpow2.f32 %v767_v22  ;;  %v777_v4 = vmul.f32 1.442695, %v3260_v20 }
 0x319   : > { %1923 = vpow2.f32 %v757_v47 }
 0x31a   : > { %v1906_v31 = vpop.eup %1905  ;;  %1925 = vpow2.f32 %v755_v23 }
 0x31b   : > { %951 = vadd.xlane.f32.xlu0 %v1906_v31  ;;  %v1908_v21 = vpop.eup %1907  ;;  %1927 = vpow2.f32 %v773_v38 }
 0x31c   : > { %v1910_v6 = vpop.eup %1909  ;;  %v780_v36 = vmul.f32 %v1908_v21, %v716_v29  ;;  %1929 = vpow2.f32 %v771_v59  ;;  %v720_v21 = vld [vmem:[#allocation4 + $0x28] sm:$0xff]  ;;  %v3259_v29 = vsub.f32 %v2880_v5, %v2896_v41  ;;  %v3261_v5 = vsub.f32 %v2900_v49, %v2915_v33  ;;  %v722_v49 = vld [vmem:[#allocation4 + $0x38] sm:$0xff]  ;;  %v1118_v59 = vld [vmem:[%s2558_s16] sm:$0xff] (!%p1573_p4) }
 0x31d   : > { %v788_v42 = vmul.f32 %v1910_v6, %v724_v56  ;;  %v1912_v8 = vpop.eup %1911  ;;  %1931 = vpow2.f32 %v761_v9  ;;  %v1106_v9 = vld [vmem:[%s2551_s18 + $0x20] sm:$0xff] (!%p1573_p4) }
 0x31e   : > { %v1914_v43 = vpop.eup %1913  ;;  %v779_v45 = vmul.f32 %v1912_v8, %v715_v0  ;;  %v759_v6 = vmul.f32 1.442695, %v3259_v29  ;;  %v775_v41 = vmul.f32 1.442695, %v3261_v5  ;;  %v727_v0 = vld [vmem:[#allocation4 + $0x60] sm:$0xff]  ;;  %v1125_v29 = vld [vmem:[%s2558_s16 + $0x38] sm:$0xff] (!%p1573_p4) }
 0x31f   : > { %v787_v39 = vmul.f32 %v1914_v43, %v723_v51  ;;  %v1916_v15 = vpop.eup %1915  ;;  %v1129_v5 = vld [vmem:[%s2558_s16 + $0x58] sm:$0xff] (!%p1573_p4) }
 0x320   : > { %v1918_v26 = vpop.eup %1917  ;;  %v782_v52 = vmul.f32 %v1916_v15, %v718_v50  ;;  %1933 = vpow2.f32 %v759_v6  ;;  %v1108_v6 = vld [vmem:[%s2551_s18 + $0x30] sm:$0xff] (!%p1573_p4) }
 0x321   : > { %v1920_v58 = vpop.eup %1919  ;;  %v790_v63 = vmul.f32 %v1918_v26, %v726_v17  ;;  %1935 = vpow2.f32 %v777_v4  ;;  %v1104_v17 = vld [vmem:[%s2551_s18 + $0x10] sm:$0xff] (!%p1573_p4) }
 0x322   : > { %v781_v60 = vmul.f32 %v1920_v58, %v717_v62  ;;  %v1922_v2 = vpop.eup %1921  ;;  %1937 = vpow2.f32 %v775_v41  ;;  %v1120_v62 = vld [vmem:[%s2558_s16 + $0x10] sm:$0xff] (!%p1573_p4) }
 0x323   : > { %v789_v61 = vmul.f32 %v1922_v2, %v725_v1  ;;  %v1924_v3 = vpop.eup %1923  ;;  %v1136_v53 = vmul.f32 (!%p1573_p4), %v1120_v62, %v1104_v17  ;;  %v1112_v41 = vld [vmem:[%s2551_s18 + $0x50] sm:$0xff] (!%p1573_p4) }
 0x324   : > { %v1926_v40 = vpop.eup %1925  ;;  %v784_v56 = vmul.f32 %v1924_v3, %v720_v21  ;;  %v1109_v21 = vld [vmem:[%s2551_s18 + $0x38] sm:$0xff] (!%p1573_p4) }
 0x325   : > { %v1928_v24 = vpop.eup %1927  ;;  %1154 = vadd.xlane.f32.xlu1 (!%p1573_p4), %v1136_v53  ;;  %v1141_v20 = vmul.f32 (!%p1573_p4), %v1125_v29, %v1109_v21 }
 0x326   : > { %v1930_v30 = vpop.eup %1929 }
 0x327   : > { %v1932_v43 = vpop.eup %1931 }
 0x32a   : > { %v1934_v51 = vpop.eup %1933 }
 0x32b   : > { %v1936_v14 = vpop.eup %1935 }
 0x32c   : > { %v1938_v27 = vpop.eup %1937 }
 0x37c   : > { %v926_v19 = vpop.xlane.xlu0 %925 }
 0x37d   : > { %v942_v25 = vpop.xlane.xlu1 %941  ;;  %v956_v35 = vadd.f32 %v926_v19, %v780_v36  ;;  %v728_v36 = vld [vmem:[#allocation4 + $0x68] sm:$0xff] }
 0x37e   : > { %v964_v37 = vadd.f32 %v942_v25, %v788_v42  ;;  %v719_v42 = vld [vmem:[#allocation4 + $0x20] sm:$0xff]  ;;  %v792_v8 = vmul.f32 %v1928_v24, %v728_v36 }
 0x37f   : > { %973 = vst.msk [vmem:[#allocation4 + $0x8] sm:$0xff] %vm971_vm1, %v956_v35  ;;  %v783_v48 = vmul.f32 %v1926_v40, %v719_v42  ;;  %v1111_v40 = vld [vmem:[%s2551_s18 + $0x48] sm:$0xff] (!%p1573_p4)  ;;  %v1110_v24 = vld [vmem:[%s2551_s18 + $0x40] sm:$0xff] (!%p1573_p4) }
 0x380   : > { %981 = vst.msk [vmem:[#allocation4 + $0x48] sm:$0xff] %vm971_vm1, %v964_v37  ;;  %v791_v37 = vmul.f32 %v1930_v30, %v727_v0  ;;  %v1114_v0 = vld [vmem:[%s2551_s18 + $0x60] sm:$0xff] (!%p1573_p4) }
 0x381   : > { %v924_v54 = vpop.xlane.xlu1 %923 }
 0x382   : > { %v955_v16 = vadd.f32 %v924_v54, %v779_v45  ;;  %v786_v54 = vmul.f32 %v1932_v43, %v722_v49  ;;  %v1117_v43 = vld [vmem:[%s2551_s18 + $0x78] sm:$0xff] (!%p1573_p4)  ;;  %v1116_v49 = vld [vmem:[%s2551_s18 + $0x70] sm:$0xff] (!%p1573_p4) }
 0x384   : > { %972 = vst.msk [vmem:[#allocation4] sm:$0xff] %vm971_vm1, %v955_v16  ;;  %v940_v44 = vpop.xlane.xlu0 %939  ;;  %v730_v16 = vld [vmem:[#allocation4 + $0x78] sm:$0xff] }
 0x385   : > { %v963_v46 = vadd.f32 %v940_v44, %v787_v39  ;;  %v721_v39 = vld [vmem:[#allocation4 + $0x30] sm:$0xff]  ;;  %v794_v44 = vmul.f32 %v1936_v14, %v730_v16 }
 0x386   : > { %v785_v50 = vmul.f32 %v1934_v51, %v721_v39  ;;  %v1216_v39 = vld [vmem:[#allocation4 + $0x8] sm:$0xff] (!%p1573_p4) }
 0x387   : > { %980 = vst.msk [vmem:[#allocation4 + $0x40] sm:$0xff] %vm971_vm1, %v963_v46 }
 0x388   : > { %v930_v55 = vpop.xlane.xlu1 %929 }
 0x389   : > { %v958_v31 = vadd.f32 %v930_v55, %v782_v52  ;;  %v793_v52 = vmul.f32 %v1938_v27, %v729_v28 }
 0x38b   : > { %975 = vst.msk [vmem:[#allocation4 + $0x18] sm:$0xff] %vm971_vm1, %v958_v31  ;;  %v1102_v31 = vld [vmem:[%s2551_s18] sm:$0xff] (!%p1573_p4) }
 0x38c   : > { %v946_v57 = vpop.xlane.xlu1 %945  ;;  %v928_v32 = vpop.xlane.xlu0 %927  ;;  %v1134_v2 = vmul.f32 (!%p1573_p4), %v1118_v59, %v1102_v31  ;;  %v1199_v31 = vld [vmem:[#allocation3] sm:$0xff] (!%p1573_p4) }
 0x38d   : > { %v966_v18 = vadd.f32 %v946_v57, %v790_v63  ;;  %v957_v11 = vadd.f32 %v928_v32, %v781_v60  ;;  %v1105_v63 = vld [vmem:[%s2551_s18 + $0x18] sm:$0xff] (!%p1573_p4)  ;;  %v1103_v57 = vld [vmem:[%s2551_s18 + $0x8] sm:$0xff] (!%p1573_p4) }
 0x38e   : > { %v1121_v60 = vld [vmem:[%s2558_s16 + $0x18] sm:$0xff] (!%p1573_p4)  ;;  %v1119_v32 = vld [vmem:[%s2558_s16 + $0x8] sm:$0xff] (!%p1573_p4)  ;;  %1150 = vadd.xlane.f32.xlu0 (!%p1573_p4), %v1134_v2  ;;  %v1223_v17 = vld [vmem:[#allocation4 + $0x40] sm:$0xff] (!%p1573_p4) }
 0x38f   : > { %983 = vst.msk [vmem:[#allocation4 + $0x58] sm:$0xff] %vm971_vm1, %v966_v18  ;;  %974 = vst.msk [vmem:[#allocation4 + $0x10] sm:$0xff] %vm971_vm1, %v957_v11  ;;  %v1137_v1 = vmul.f32 (!%p1573_p4), %v1121_v60, %v1105_v63  ;;  %v1135_v18 = vmul.f32 (!%p1573_p4), %v1119_v32, %v1103_v57  ;;  %v1107_v11 = vld [vmem:[%s2551_s18 + $0x28] sm:$0xff] (!%p1573_p4)  ;;  %v1202_v57 = vld [vmem:[#allocation3 + $0x18] sm:$0xff] (!%p1573_p4) }
 0x390   : > { %v944_v7 = vpop.xlane.xlu0 %943  ;;  %v1139_v3 = vmul.f32 (!%p1573_p4), %v1123_v12, %v1107_v11 }
 0x391   : > { %v965_v10 = vadd.f32 %v944_v7, %v789_v61  ;;  %v1122_v61 = vld [vmem:[%s2558_s16 + $0x20] sm:$0xff] (!%p1573_p4)  ;;  %1156 = vadd.xlane.f32.xlu1 (!%p1573_p4), %v1137_v1 }
 0x392   : > { %1152 = vadd.xlane.f32.xlu0 (!%p1573_p4), %v1135_v18  ;;  %v1138_v7 = vmul.f32 (!%p1573_p4), %v1122_v61, %v1106_v9  ;;  %v1218_v16 = vld [vmem:[#allocation4 + $0x18] sm:$0xff] (!%p1573_p4) }
 0x393   : > { %982 = vst.msk [vmem:[#allocation4 + $0x50] sm:$0xff] %vm971_vm1, %v965_v10  ;;  %v1124_v10 = vld [vmem:[%s2558_s16 + $0x30] sm:$0xff] (!%p1573_p4) }
 0x394   : > { %v934_v34 = vpop.xlane.xlu1 %933  ;;  %v1140_v4 = vmul.f32 (!%p1573_p4), %v1124_v10, %v1108_v6 }
 0x395   : > { %v960_v19 = vadd.f32 %v934_v34, %v784_v56  ;;  %1160 = vadd.xlane.f32.xlu1 (!%p1573_p4), %v1139_v3  ;;  %v1127_v56 = vld [vmem:[%s2558_s16 + $0x48] sm:$0xff] (!%p1573_p4)  ;;  %v1126_v34 = vld [vmem:[%s2558_s16 + $0x40] sm:$0xff] (!%p1573_p4) }
 0x396   : > { %1158 = vadd.xlane.f32.xlu0 (!%p1573_p4), %v1138_v7  ;;  %v1143_v36 = vmul.f32 (!%p1573_p4), %v1127_v56, %v1111_v40  ;;  %v1142_v42 = vmul.f32 (!%p1573_p4), %v1126_v34, %v1110_v24  ;;  %v1217_v14 = vld [vmem:[#allocation4 + $0x10] sm:$0xff] (!%p1573_p4)  ;;  %v1226_v32 = vld [vmem:[#allocation4 + $0x58] sm:$0xff] (!%p1573_p4)  ;;  %v1200_v7 = vld [vmem:[#allocation3 + $0x8] sm:$0xff] (!%p1573_p4) }
 0x397   : > { %977 = vst.msk [vmem:[#allocation4 + $0x28] sm:$0xff] %vm971_vm1, %v960_v19  ;;  %v1113_v19 = vld [vmem:[%s2551_s18 + $0x58] sm:$0xff] (!%p1573_p4)  ;;  %1939 = vlog2.f32 (!%p1573_p4), %v1217_v14 }
 0x398   : > { %v950_v25 = vpop.xlane.xlu1 %949  ;;  %v932_v35 = vpop.xlane.xlu0 %931 }
 0x399   : > { %v968_v13 = vadd.f32 %v950_v25, %v792_v8  ;;  %v959_v22 = vadd.f32 %v932_v35, %v783_v48  ;;  %1164 = vadd.xlane.f32.xlu1 (!%p1573_p4), %v1141_v20  ;;  %v1128_v8 = vld [vmem:[%s2558_s16 + $0x50] sm:$0xff] (!%p1573_p4)  ;;  %v1145_v48 = vmul.f32 (!%p1573_p4), %v1129_v5, %v1113_v19  ;;  %v1115_v25 = vld [vmem:[%s2551_s18 + $0x68] sm:$0xff] (!%p1573_p4) }
 0x39a   : > { %1162 = vadd.xlane.f32.xlu0 (!%p1573_p4), %v1140_v4  ;;  %v1144_v30 = vmul.f32 (!%p1573_p4), %v1128_v8, %v1112_v41  ;;  %v1131_v35 = vld [vmem:[%s2558_s16 + $0x68] sm:$0xff] (!%p1573_p4)  ;;  %v1225_v9 = vld [vmem:[#allocation4 + $0x50] sm:$0xff] (!%p1573_p4) }
 0x39b   : > { %985 = vst.msk [vmem:[#allocation4 + $0x68] sm:$0xff] %vm971_vm1, %v968_v13  ;;  %976 = vst.msk [vmem:[#allocation4 + $0x20] sm:$0xff] %vm971_vm1, %v959_v22  ;;  %v1130_v13 = vld [vmem:[%s2558_s16 + $0x60] sm:$0xff] (!%p1573_p4)  ;;  %v1147_v22 = vmul.f32 (!%p1573_p4), %v1131_v35, %v1115_v25  ;;  %v1204_v19 = vld [vmem:[#allocation3 + $0x28] sm:$0xff] (!%p1573_p4) }
 0x39c   : > { %v948_v45 = vpop.xlane.xlu0 %947 }
 0x39d   : > { %v967_v33 = vadd.f32 %v948_v45, %v791_v37  ;;  %1168 = vadd.xlane.f32.xlu1 (!%p1573_p4), %v1143_v36  ;;  %v1146_v37 = vmul.f32 (!%p1573_p4), %v1130_v13, %v1114_v0  ;;  %v1133_v45 = vld [vmem:[%s2558_s16 + $0x78] sm:$0xff] (!%p1573_p4) }
 0x39e   : > { %1166 = vadd.xlane.f32.xlu0 (!%p1573_p4), %v1142_v42  ;;  %v1149_v51 = vmul.f32 (!%p1573_p4), %v1133_v45, %v1117_v43  ;;  %v1206_v45 = vld [vmem:[#allocation3 + $0x38] sm:$0xff] (!%p1573_p4) }
 0x39f   : > { %984 = vst.msk [vmem:[#allocation4 + $0x60] sm:$0xff] %vm971_vm1, %v967_v33  ;;  %v1132_v33 = vld [vmem:[%s2558_s16 + $0x70] sm:$0xff] (!%p1573_p4) }
 0x3a0   : > { %v938_v47 = vpop.xlane.xlu1 %937 }
 0x3a1   : > { %v962_v15 = vadd.f32 %v938_v47, %v786_v54  ;;  %1172 = vadd.xlane.f32.xlu1 (!%p1573_p4), %v1145_v48  ;;  %v1148_v54 = vmul.f32 (!%p1573_p4), %v1132_v33, %v1116_v49  ;;  %v1215_v47 = vld [vmem:[#allocation4] sm:$0xff] (!%p1573_p4)  ;;  %v1940_v27 = vpop.eup (!%p1573_p4), %1939 }
 0x3a2   : > { %1170 = vadd.xlane.f32.xlu0 (!%p1573_p4), %v1144_v30  ;;  %1941 = vlog2.f32 (!%p1573_p4), %v1215_v47  ;;  %v1228_v24 = vld [vmem:[#allocation4 + $0x68] sm:$0xff] (!%p1573_p4)  ;;  %v1203_v30 = vld [vmem:[#allocation3 + $0x20] sm:$0xff] (!%p1573_p4) }
 0x3a3   : > { %979 = vst.msk [vmem:[#allocation4 + $0x38] sm:$0xff] %vm971_vm1, %v962_v15  ;;  %1943 = vlog2.f32 (!%p1573_p4), %v1218_v16  ;;  %v1220_v15 = vld [vmem:[#allocation4 + $0x28] sm:$0xff] (!%p1573_p4) }
 0x3a4   : > { %v954_v23 = vpop.xlane.xlu1 %953  ;;  %v936_v46 = vpop.xlane.xlu0 %935  ;;  %1945 = vlog2.f32 (!%p1573_p4), %v1216_v39 }
 0x3a5   : > { %v970_v38 = vadd.f32 %v954_v23, %v794_v44  ;;  %v961_v26 = vadd.f32 %v936_v46, %v785_v50  ;;  %1101 = sbr.rel (%p1573_p4) target bundleno = 1087 (0x43f), region = 56  ;;  %1176 = vadd.xlane.f32.xlu1 (!%p1573_p4), %v1147_v22  ;;  %v1219_v44 = vld [vmem:[#allocation4 + $0x20] sm:$0xff] (!%p1573_p4)  ;;  %1947 = vlog2.f32 (!%p1573_p4), %v1220_v15 }
 0x3a6   : > { %1174 = vadd.xlane.f32.xlu0 (!%p1573_p4), %v1146_v37  ;;  %1949 = vlog2.f32 (!%p1573_p4), %v1219_v44  ;;  %v1227_v41 = vld [vmem:[#allocation4 + $0x60] sm:$0xff] (!%p1573_p4)  ;;  %v1205_v44 = vld [vmem:[#allocation3 + $0x30] sm:$0xff] (!%p1573_p4) }
 0x3a7   : > { %987 = vst.msk [vmem:[#allocation4 + $0x78] sm:$0xff] %vm971_vm1, %v970_v38  ;;  %978 = vst.msk [vmem:[#allocation4 + $0x30] sm:$0xff] %vm971_vm1, %v961_v26  ;;  %v1236_v38 = vmul.f32 (!%p1573_p4), 0.6931472, %v1940_v27  ;;  %v1224_v26 = vld [vmem:[#allocation4 + $0x48] sm:$0xff] (!%p1573_p4) }
 0x3a8   : > { %v952_v58 = vpop.xlane.xlu0 %951 }
 0x3a9   : > { %v969_v55 = vadd.f32 %v952_v58, %v793_v52  ;;  %1180 = vadd.xlane.f32.xlu1 (!%p1573_p4), %v1149_v51  ;;  %v3045_v52 = vstv (!%p1573_p4), %s2573_s6  ;;  %v1201_v58 = vld [vmem:[#allocation3 + $0x10] sm:$0xff] (!%p1573_p4) }
 0x3aa   : > { %1178 = vadd.xlane.f32.xlu0 (!%p1573_p4), %v1148_v54  ;;  %v1222_v50 = vld [vmem:[#allocation4 + $0x38] sm:$0xff] (!%p1573_p4)  ;;  %v1265_v63 = vadd.f32 (!%p1573_p4), %v1236_v38, %v1201_v58 }
 0x3ab   : > { %986 = vst.msk [vmem:[#allocation4 + $0x70] sm:$0xff] %vm971_vm1, %v969_v55  ;;  %1951 = vlog2.f32 (!%p1573_p4), %v1222_v50 }
 0x3ac   : > { %v1942_v46 = vpop.eup %1941 }
 0x3ad   : > { %v1944_v28 = vpop.eup %1943  ;;  %v1232_v55 = vmul.f32 0.6931472, %v1942_v46 }
 0x3ae   : > { %v1221_v23 = vld [vmem:[#allocation4 + $0x30] sm:$0xff]  ;;  %v1946_v62 = vpop.eup %1945  ;;  %v1238_v59 = vmul.f32 0.6931472, %v1944_v28  ;;  %v1230_v49 = vld [vmem:[#allocation4 + $0x78] sm:$0xff] }
 0x3af   : > { %1953 = vlog2.f32 %v1221_v23  ;;  %v1948_v1 = vpop.eup %1947  ;;  %v1263_v18 = vadd.f32 %v1232_v55, %v1199_v31  ;;  %v1234_v12 = vmul.f32 0.6931472, %v1946_v62  ;;  %v1208_v31 = vld [vmem:[#allocation3 + $0x48] sm:$0xff] }
 0x3b0   : > { %1955 = vlog2.f32 %v1224_v26  ;;  %v1950_v61 = vpop.eup %1949  ;;  %v1266_v29 = vadd.f32 %v1238_v59, %v1202_v57  ;;  %v1242_v56 = vmul.f32 0.6931472, %v1948_v1 }
 0x3b1   : > { %1957 = vlog2.f32 %v1223_v17  ;;  %v1264_v36 = vadd.f32 %v1234_v12, %v1200_v7  ;;  %v1240_v5 = vmul.f32 0.6931472, %v1950_v61 }
 0x3b2   : > { %v1155_v53 = vpop.xlane.xlu1 %1154  ;;  %1959 = vlog2.f32 %v1226_v32  ;;  %v1268_v22 = vadd.f32 %v1242_v56, %v1204_v19  ;;  %v1229_v16 = vld [vmem:[#allocation4 + $0x70] sm:$0xff] }
 0x3b3   : > { %v1185_v60 = vmul.f32 %v3045_v52, %v1155_v53  ;;  %1961 = vlog2.f32 %v1225_v9  ;;  %v1267_v54 = vadd.f32 %v1240_v5, %v1203_v30 }
 0x3b4   : > { %1963 = vlog2.f32 %v1228_v24 }
 0x3b5   : > { %v1281_v3 = vmul.f32 2.0, %v1185_v60  ;;  %v1952_v10 = vpop.eup %1951  ;;  %1965 = vlog2.f32 %v1227_v41  ;;  %v1207_v60 = vld [vmem:[#allocation3 + $0x40] sm:$0xff] }
 0x3b6   : > { %v1246_v0 = vmul.f32 0.6931472, %v1952_v10  ;;  %1967 = vlog2.f32 %v1230_v49 }
 0x3b7   : > { %v1297_v20 = vsub.f32 %v1265_v63, %v1281_v3  ;;  %1969 = vlog2.f32 %v1229_v16 }
 0x3b8   : > { %v1270_v27 = vadd.f32 %v1246_v0, %v1206_v45  ;;  %v1211_v0 = vld [vmem:[#allocation3 + $0x60] sm:$0xff] }
 0x3b9   : > { %v1954_v8 = vpop.eup %1953  ;;  %1313 = vst.msk [vmem:[%s2578_s0 + $0x10] sm:$0xff] %vm971_vm1, %v1297_v20  ;;  %v1209_v20 = vld [vmem:[#allocation3 + $0x50] sm:$0xff] }
 0x3ba   : > { %v1956_v33 = vpop.eup %1955  ;;  %v1244_v47 = vmul.f32 0.6931472, %v1954_v8 }
 0x3bb   : > { %v1958_v39 = vpop.eup %1957  ;;  %v1250_v26 = vmul.f32 0.6931472, %v1956_v33 }
 0x3bc   : > { %v1960_v58 = vpop.eup %1959  ;;  %v1269_v17 = vadd.f32 %v1244_v47, %v1205_v44  ;;  %v1248_v53 = vmul.f32 0.6931472, %v1958_v39  ;;  %v1214_v47 = vld [vmem:[#allocation3 + $0x78] sm:$0xff] }
 0x3bd   : > { %v1962_v59 = vpop.eup %1961  ;;  %v1272_v1 = vadd.f32 %v1250_v26, %v1208_v31  ;;  %v1254_v12 = vmul.f32 0.6931472, %v1960_v58 }
 0x3be   : > { %v1964_v9 = vpop.eup %1963  ;;  %v1271_v3 = vadd.f32 %v1248_v53, %v1207_v60 }
 0x41b   : > { %v1151_v2 = vpop.xlane.xlu0 %1150 }
 0x41c   : > { %v1183_v11 = vmul.f32 %v3045_v52, %v1151_v2 }
 0x41e   : > { %v1279_v21 = vmul.f32 2.0, %v1183_v11  ;;  %v1157_v6 = vpop.xlane.xlu1 %1156 }
 0x41f   : > { %v1186_v4 = vmul.f32 %v3045_v52, %v1157_v6  ;;  %v1153_v40 = vpop.xlane.xlu0 %1152  ;;  %v1966_v6 = vpop.eup %1965 }
 0x420   : > { %v1295_v34 = vsub.f32 %v1263_v18, %v1279_v21  ;;  %v1184_v42 = vmul.f32 %v3045_v52, %v1153_v40  ;;  %v1210_v21 = vld [vmem:[#allocation3 + $0x58] sm:$0xff]  ;;  %v1968_v19 = vpop.eup %1967  ;;  %v1256_v30 = vmul.f32 0.6931472, %v1966_v6 }
 0x421   : > { %v1282_v48 = vmul.f32 2.0, %v1186_v4  ;;  %v1274_v24 = vadd.f32 %v1254_v12, %v1210_v21  ;;  %v1262_v33 = vmul.f32 0.6931472, %v1968_v19 }
 0x422   : > { %1311 = vst.msk [vmem:[%s2578_s0] sm:$0xff] %vm971_vm1, %v1295_v34  ;;  %v1280_v25 = vmul.f32 2.0, %v1184_v42  ;;  %v1161_v35 = vpop.xlane.xlu1 %1160  ;;  %v1258_v42 = vmul.f32 0.6931472, %v1964_v9 }
 0x423   : > { %v1298_v13 = vsub.f32 %v1266_v29, %v1282_v48  ;;  %v1188_v37 = vmul.f32 %v3045_v52, %v1161_v35  ;;  %v1159_v43 = vpop.xlane.xlu0 %1158  ;;  %v1252_v29 = vmul.f32 0.6931472, %v1962_v59  ;;  %v1212_v48 = vld [vmem:[#allocation3 + $0x68] sm:$0xff] }
 0x424   : > { %v1296_v51 = vsub.f32 %v1264_v36, %v1280_v25  ;;  %v1187_v14 = vmul.f32 %v3045_v52, %v1159_v43  ;;  %v1970_v25 = vpop.eup %1969  ;;  %v1276_v43 = vadd.f32 %v1258_v42, %v1212_v48 }
 0x425   : > { %1314 = vst.msk [vmem:[%s2578_s0 + $0x18] sm:$0xff] %vm971_vm1, %v1298_v13  ;;  %v1284_v15 = vmul.f32 2.0, %v1188_v37  ;;  %v1273_v41 = vadd.f32 %v1252_v29, %v1209_v20  ;;  %v1260_v16 = vmul.f32 0.6931472, %v1970_v25 }
 0x426   : > { %1312 = vst.msk [vmem:[%s2578_s0 + $0x8] sm:$0xff] %vm971_vm1, %v1296_v51  ;;  %v1283_v50 = vmul.f32 2.0, %v1187_v14  ;;  %v1165_v23 = vpop.xlane.xlu1 %1164 }
 0x427   : > { %v1300_v46 = vsub.f32 %v1268_v22, %v1284_v15  ;;  %v1190_v28 = vmul.f32 %v3045_v52, %v1165_v23  ;;  %v1163_v38 = vpop.xlane.xlu0 %1162  ;;  %v1213_v15 = vld [vmem:[#allocation3 + $0x70] sm:$0xff]  ;;  %v1278_v23 = vadd.f32 %v1262_v33, %v1214_v47 }
 0x428   : > { %v1299_v55 = vsub.f32 %v1267_v54, %v1283_v50  ;;  %v1189_v62 = vmul.f32 %v3045_v52, %v1163_v38  ;;  %v1275_v54 = vadd.f32 %v1256_v30, %v1211_v0  ;;  %v1277_v26 = vadd.f32 %v1260_v16, %v1213_v15 }
 0x429   : > { %1316 = vst.msk [vmem:[%s2578_s0 + $0x28] sm:$0xff] %vm971_vm1, %v1300_v46  ;;  %v1286_v63 = vmul.f32 2.0, %v1190_v28 }
 0x42a   : > { %1315 = vst.msk [vmem:[%s2578_s0 + $0x20] sm:$0xff] %vm971_vm1, %v1299_v55  ;;  %v1285_v2 = vmul.f32 2.0, %v1189_v62  ;;  %v1169_v57 = vpop.xlane.xlu1 %1168 }
 0x42b   : > { %v1302_v32 = vsub.f32 %v1270_v27, %v1286_v63  ;;  %v1192_v18 = vmul.f32 %v3045_v52, %v1169_v57  ;;  %v1167_v11 = vpop.xlane.xlu0 %1166 }
 0x42c   : > { %v1301_v61 = vsub.f32 %v1269_v17, %v1285_v2  ;;  %v1191_v7 = vmul.f32 %v3045_v52, %v1167_v11 }
 0x42d   : > { %1318 = vst.msk [vmem:[%s2578_s0 + $0x38] sm:$0xff] %vm971_vm1, %v1302_v32  ;;  %v1288_v10 = vmul.f32 2.0, %v1192_v18 }
 0x42e   : > { %1317 = vst.msk [vmem:[%s2578_s0 + $0x30] sm:$0xff] %vm971_vm1, %v1301_v61  ;;  %v1287_v4 = vmul.f32 2.0, %v1191_v7  ;;  %v1173_v40 = vpop.xlane.xlu1 %1172 }
 0x42f   : > { %v1304_v56 = vsub.f32 %v1272_v1, %v1288_v10  ;;  %v1194_v34 = vmul.f32 %v3045_v52, %v1173_v40  ;;  %v1171_v36 = vpop.xlane.xlu0 %1170 }
 0x430   : > { %v1303_v5 = vsub.f32 %v1271_v3, %v1287_v4  ;;  %v1193_v8 = vmul.f32 %v3045_v52, %v1171_v36 }
 0x431   : > { %1320 = vst.msk [vmem:[%s2578_s0 + $0x48] sm:$0xff] %vm971_vm1, %v1304_v56  ;;  %v1290_v35 = vmul.f32 2.0, %v1194_v34 }
 0x432   : > { %1319 = vst.msk [vmem:[%s2578_s0 + $0x40] sm:$0xff] %vm971_vm1, %v1303_v5  ;;  %v1289_v13 = vmul.f32 2.0, %v1193_v8  ;;  %v1177_v22 = vpop.xlane.xlu1 %1176 }
 0x433   : > { %v1306_v37 = vsub.f32 %v1274_v24, %v1290_v35  ;;  %v1196_v45 = vmul.f32 %v3045_v52, %v1177_v22  ;;  %v1175_v49 = vpop.xlane.xlu0 %1174 }
 0x434   : > { %v1305_v51 = vsub.f32 %v1273_v41, %v1289_v13  ;;  %v1195_v14 = vmul.f32 %v3045_v52, %v1175_v49 }
 0x435   : > { %1322 = vst.msk [vmem:[%s2578_s0 + $0x58] sm:$0xff] %vm971_vm1, %v1306_v37  ;;  %v1292_v39 = vmul.f32 2.0, %v1196_v45 }
 0x436   : > { %1321 = vst.msk [vmem:[%s2578_s0 + $0x50] sm:$0xff] %vm971_vm1, %v1305_v51  ;;  %v1291_v44 = vmul.f32 2.0, %v1195_v14  ;;  %v1181_v50 = vpop.xlane.xlu1 %1180 }
 0x437   : > { %v1308_v27 = vsub.f32 %v1276_v43, %v1292_v39  ;;  %v1198_v46 = vmul.f32 %v3045_v52, %v1181_v50  ;;  %v1179_v28 = vpop.xlane.xlu0 %1178 }
 0x438   : > { %v1307_v38 = vsub.f32 %v1275_v54, %v1291_v44  ;;  %v1197_v58 = vmul.f32 %v3045_v52, %v1179_v28 }
 0x439   : > { %1324 = vst.msk [vmem:[%s2578_s0 + $0x68] sm:$0xff] %vm971_vm1, %v1308_v27  ;;  %v1294_v55 = vmul.f32 2.0, %v1198_v46 }
 0x43a   : > { %1323 = vst.msk [vmem:[%s2578_s0 + $0x60] sm:$0xff] %vm971_vm1, %v1307_v38  ;;  %v1293_v17 = vmul.f32 2.0, %v1197_v58 }
 0x43b   : > { %v1310_v62 = vsub.f32 %v1278_v23, %v1294_v55 }
 0x43c   : > { %v1309_v31 = vsub.f32 %v1277_v26, %v1293_v17 }
 0x43d   : > { %1326 = vst.msk [vmem:[%s2578_s0 + $0x78] sm:$0xff] %vm971_vm1, %v1310_v62 }
 0x43e   : > { %1325 = vst.msk [vmem:[%s2578_s0 + $0x70] sm:$0xff] %vm971_vm1, %v1309_v31 }
 0x43f PF: > { %s3262_s18 = sld [smem:[#allocation22_spill]]  ;;  %s1576_s16 = sshll.u32 %s2211_s29, 5 }
 0x440   : > { %s3263_s9 = sld [smem:[#allocation28_spill]]  ;;  %s1355_s6 = sshll.u32 %s2580_s23, 4  ;;  %s1356_s6 = int_to_ptr.vmem [resolvable:$true] %s1355_s6 }
 0x441   : > { %s1333_s13 = scalar_lea.sflag [#allocation8], %s2547_s19  ;;  %s2061_s11 = scalar_lea.vmem %s1356_s6, 32 }
 0x442   : > { %p2062_p1 = scmp.ne.s32.totalorder %s1356_s6, %s2061_s11  ;;  %s2233_s5 = smov [#allocation12]  }
 0x443   : > { %s2065_s20 = sshll.u32 %s2233_s5, 4  ;;  %s2066_s20 = int_to_ptr.vmem [resolvable:$false] %s2065_s20 }
 0x444   : > { %s2067_s0 = scalar_lea.vmem %s2066_s20, 64  ;;  %p2068_p5 = scmp.lt.s32.totalorder %s1356_s6, %s2066_s20 }
 0x445   : > { %p3264_p8 = scmp.ne.s32.totalorder %s3262_s18, 0  ;;  %p2069_p0 = scmp.lt.s32.totalorder %s2067_s0, %s2061_s11 }
 0x446   : > { %s3101_s12 = scalar_lea.hbm %s3263_s9, %s1576_s16 }
 0x447   : > { %p2063_p12 = pnand %p2062_p1, %p3264_p8  ;;  %p2070_p7 = por %p2069_p0, %p2068_p5 }
 0x449   : > { %p2064_p13 = pneg %p2063_p12 }
 0x44b   : > { %p2071_p3 = pnand %p2070_p7, %p2064_p13 }
 0x44d   : > { %2074 = shalt.err (!%p2071_p3)
}
 0x44e   : > { %s2075_s23 = scalar_lea.hbm %s3101_s12, 32  ;;  %s2079_s4 = scalar_lea.hbm %s3263_s9, 64 }
 0x44f   : > { %p2076_p11 = scmp.ne.s32.totalorder %s3101_s12, %s2075_s23  ;;  %p2080_p2 = scmp.lt.u32.totalorder %s3101_s12, %s3263_s9 }
 0x450   : > { %p2081_p6 = scmp.lt.u32.totalorder %s2079_s4, %s2075_s23  ;;  %p2083_p1 = scmp.lt.u32.totalorder %s2075_s23, %s3101_s12 }
 0x451   : > { %p2077_p10 = pnand %p2076_p11, %p3264_p8 }
 0x452   : > { %p2082_p4 = por %p2081_p6, %p2080_p2 }
 0x453   : > { %p2078_p9 = pneg %p2077_p10 }
 0x454   : > { %p2084_p12 = por %p2083_p1, %p2082_p4 }
 0x456   : > { %p2085_p13 = pnand %p2084_p12, %p2078_p9 }
 0x458   : > { %2088 = shalt.err (!%p2085_p13)
}
 0x459   : > { %1725 = dma.vmem_to_hbm [thread:$0]  (%p3264_p8), %s1356_s6, 32, %s3101_s12, %s1333_s13  }
 0x45a   : > { %s3265_s5 = sld [smem:[#allocation29_spill]]  ;;  %s1368_s0 = sshll.u32 %s2582_s10, 4  ;;  %s1369_s0 = int_to_ptr.vmem [resolvable:$true] %s1368_s0 }
 0x45b   : > { %s1338_s23 = scalar_lea.sflag [#allocation14], %s2547_s19  ;;  %s2089_s2 = scalar_lea.vmem %s1369_s0, 32 }
 0x45c   : > { %p2090_p5 = scmp.ne.s32.totalorder %s1369_s0, %s2089_s2  ;;  %s2234_s1 = smov [#allocation13]  }
 0x45d   : > { %s2093_s4 = sshll.u32 %s2234_s1, 4  ;;  %s2094_s4 = int_to_ptr.vmem [resolvable:$false] %s2093_s4 }
 0x45e   : > { %p2091_p0 = pnand %p2090_p5, %p3264_p8  ;;  %s2095_s17 = scalar_lea.vmem %s2094_s4, 64 }
 0x45f   : > { %p2096_p3 = scmp.lt.s32.totalorder %s1369_s0, %s2094_s4  ;;  %p2097_p11 = scmp.lt.s32.totalorder %s2095_s17, %s2089_s2 }
 0x460   : > { %s3127_s20 = scalar_lea.hbm %s3265_s5, %s1576_s16  ;;  %p2092_p7 = pneg %p2091_p0 }
 0x461   : > { %p2098_p10 = por %p2097_p11, %p2096_p3 }
 0x463   : > { %p2099_p9 = pnand %p2098_p10, %p2092_p7 }
 0x465   : > { %2102 = shalt.err (!%p2099_p9)
}
 0x466   : > { %s2103_s29 = scalar_lea.hbm %s3127_s20, 32  ;;  %s2107_s16 = scalar_lea.hbm %s3265_s5, 64 }
 0x467   : > { %p2104_p2 = scmp.ne.s32.totalorder %s3127_s20, %s2103_s29  ;;  %p2108_p1 = scmp.lt.u32.totalorder %s3127_s20, %s3265_s5 }
 0x468   : > { %p2109_p12 = scmp.lt.u32.totalorder %s2107_s16, %s2103_s29  ;;  %p2111_p5 = scmp.lt.u32.totalorder %s2103_s29, %s3127_s20 }
 0x469   : > { %p2105_p6 = pnand %p2104_p2, %p3264_p8 }
 0x46a   : > { %p2110_p13 = por %p2109_p12, %p2108_p1 }
 0x46b   : > { %p2106_p4 = pneg %p2105_p6 }
 0x46c   : > { %p2112_p0 = por %p2111_p5, %p2110_p13 }
 0x46e   : > { %p2113_p7 = pnand %p2112_p0, %p2106_p4 }
 0x470   : > { %2116 = shalt.err (!%p2113_p7)
}
 0x471   : > { %1726 = dma.vmem_to_hbm [thread:$0]  (%p3264_p8), %s1369_s0, 32, %s3127_s20, %s1338_s23  }
 0x472 PF: > { %s3266_s13 = sld [smem:[#allocation20_spill]]  ;;  %s3267_s26 = sld [smem:[#allocation23_spill]] }
 0x473   : > { %p1747_p3 = scmp.ge.s32.totalorder %s2223_s8, 2 }
 0x478   : > { %s1388_s15 = sand.u32 1, %s3266_s13   ;;  %p3268_p11 = scmp.ne.s32.totalorder %s3267_s26, 0 }
 0x479   : > { %s1389_s11 = scalar_lea.sflag [#allocation8], %s1388_s15 }
 0x47a   : > { %p1740_p10 = pnand %p1747_p3, %p3268_p11 }
 0x47c   : > { %2174 = dma.done.wait (!%p1740_p10), %s1389_s11, 32  }
 0x47d   : > { %2176 = vsyncadd (!%p1740_p10), %s1389_s11, 4294967264  ;;  %s1398_s2 = scalar_lea.sflag [#allocation14], %s1388_s15 }
 0x47e   : > { %2178 = dma.done.wait (!%p1740_p10), %s1398_s2, 32  }
 0x47f   : > { %2180 = vsyncadd (!%p1740_p10), %s1398_s2, 4294967264  ;;  %s30_s8 = sadd.s32 1, %s2223_s8   ;;  %s3269_s18 = sld [smem:[#allocation24_spill]] }
 0x480   : > { %p27_p9 = scmp.ge.s32.totalorder %s30_s8, 6   ;;  %s3270_s23 = smov %s2187_s24 }
 0x481   : > { %s3271_s24 = smov %s2191_s25  ;;  %s3272_s25 = smov %s2490_s21 }
 0x482   : > { %s3273_s26 = smov %s2199_s27  ;;  %s3274_s27 = smov %s2203_s28 }
 0x483   : > { %s3275_s28 = smov %s2498_s14  ;;  %s3276_s0 = smov %s2215_s30 }
 0x484   : > { %s3277_s29 = smov %s2219_s7  ;;  %s3279_s7 = smov %s3285_s22 }
 0x485   : > { %s3278_s30 = smov %s3269_s18  ;;  %29 = sbr.rel (!%p27_p9) target bundleno = 20 (0x14), region = 144 }
 0x48c   :  { %1403 = vsyncpa [#allocation7], 1 }
 0x48d   :  { %1405 = vsyncpa [#allocation7 + $0x1], 1 }
 0x48e   :  { %1406 = vsyncpa [#allocation10], 1 }
 0x48f   :  { %1408 = vsyncpa [#allocation10 + $0x1], 1 }
 0x490   :  { %1409 = vsyncpa [#allocation8], 1 }
 0x491   :  { %1411 = vsyncpa [#allocation8 + $0x1], 1 }
 0x492   :  { %1412 = vsyncpa [#allocation14], 1 }
 0x493   :  { %1414 = vsyncpa [#allocation14 + $0x1], 1 }

</bundles_post_ra>
